<compile_context>
chip_gen: v6e
topology: v6e:2x2x1
jax: 0.10.0
libtpu: 0.0.40
codegen_flags: <defaults>
</compile_context>

<pallas_src>
import math

import jax
import jax.numpy as jnp
import numpy as np
from jax.experimental import pallas as pl
from jax.experimental.pallas import tpu as pltpu


def make_self_attention_kernel(num_heads: int, hidden: int, *,
                               eps: float = 1e-12,
                               matmul_dtype=jnp.bfloat16):
    H = num_heads
    L = 128  # lanes per packed block (P logical rows x hidden)

    def kernel(x_ref, wbig_ref, bbig_ref, wd_ref, bd_ref, seg_ref, mln_ref,
               gamma_ref, beta_ref, o_ref):
        x = x_ref[...].astype(jnp.float32)                       # [TP, 128]

        # Fused, 128-aligned QKV projection:
        #   slab = [ Q | K_0..K_{H-1} | V_0..V_{H-1} ], each block 128 lanes.
        # K_s / V_s carry a rotate-by-s-heads column permutation folded into
        # the packed block-diagonal weights (done host-side in the wrapper).
        slab = (jnp.dot(x.astype(matmul_dtype), wbig_ref[...],
                        preferred_element_type=jnp.float32)
                + bbig_ref[...])                                 # [TP,(1+2H)*128]
        q = slab[:, 0:L]                                         # [TP, 128]
        seg = seg_ref[...]

        # raw_s[r, c*D + h*Dh + d] = scores[n, h, (h+s)%H] (n = logical row c
        # of physical row r), broadcast over the head's Dh lanes.  The Dh-sum,
        # its broadcast and the 1/sqrt(Dh) scale all run on the MXU via `seg`;
        # every vreg stays full width.
        raws = []
        for s in range(H):
            k_s = slab[:, (1 + s) * L:(2 + s) * L]
            raws.append(jnp.dot((q * k_s).astype(matmul_dtype), seg,
                                preferred_element_type=jnp.float32))

        # softmax over the H head-slots (full-width max/exp/sum chains).
        m = raws[0]
        for r in raws[1:]:
            m = jnp.maximum(m, r)
        exps = [jnp.exp(r - m) for r in raws]                    # EUP
        denom = exps[0]
        acc = exps[0] * slab[:, (1 + H) * L:(2 + H) * L]
        for s in range(1, H):
            denom = denom + exps[s]
            acc = acc + exps[s] * slab[:, (1 + H + s) * L:(2 + H + s) * L]
        ctx = acc * pl.reciprocal(denom, approx=True)            # [TP, 128]

        # output dense projection (block-diagonal-replicated Wd).
        hs = (jnp.dot(ctx.astype(matmul_dtype), wd_ref[...],
                      preferred_element_type=jnp.float32)
              + bd_ref[...])                                     # [TP, 128]

        # TODO(synk): out_dropout(p=0.2) implemented as identity (inference mode).

        # residual + TF-style LayerNorm.  Per-logical-row (32-lane-group) means
        # ride the MXU via the f32 block-mean matrix `mln`; rsqrt on the EUP;
        # statistics stay f32 and use the centered (stable) variance.
        y = hs + x
        mln = mln_ref[...]
        u = jnp.dot(y, mln, preferred_element_type=jnp.float32)
        c = y - u
        var = jnp.dot(c * c, mln, preferred_element_type=jnp.float32)
        normed = c * jax.lax.rsqrt(var + eps)
        o_ref[...] = (gamma_ref[...] * normed + beta_ref[...]).astype(o_ref.dtype)

    return kernel


def _rot_cols(D: int, Dh: int, s: int) -> np.ndarray:
    """Column indices such that w[:, cols][:, h*Dh+d] == w[:, ((h+s)%H)*Dh+d]."""
    H = D // Dh
    j = np.arange(D)
    return ((j // Dh + s) % H) * Dh + (j % Dh)


def self_attention_forward(x, params, *, num_heads, tile_n=256,
                           matmul_dtype=jnp.bfloat16, eps=1e-12):
    """Fused SelfAttention forward (eval mode: dropout is identity).

    x: [N, D] float32.  params: weights in [in, out] layout, biases [1, out].
    matmul_dtype controls the MXU input dtype only (bf16 recommended on
    v6e/v7x); accumulation, softmax and LayerNorm stay f32.
    tile_n: logical rows per grid step.  Keep the grid even with >=2 steps per
    core on v7x (2 TensorCores); on single-TC v5e/v6e, tile_n=N is best.
    """
    N, D = x.shape
    H = num_heads
    assert D % H == 0
    Dh = D // H
    assert 128 % D == 0, "row-packed layout requires hidden size dividing 128"
    P = 128 // D                      # logical rows packed per 128-lane row
    tile = min(tile_n, N)
    # TODO(synk): no remainder handling; N must be a multiple of the tile.
    assert N % tile == 0 and tile % (8 * P) == 0, (N, tile, P)
    TP = tile // P                    # physical rows per grid step
    Np = N // P

    f32 = jnp.float32
    eyeP = jnp.eye(P, dtype=f32)
    bdiag = lambda w: jnp.kron(eyeP, w.astype(f32))   # [D,D] -> [128,128]
    rep = lambda b: jnp.tile(b.astype(f32), (1, P))   # [1,D] -> [1,128]

    # ---- one-time host-side parameter packing (outside the kernel) ---------
    wq, wk, wv, wd = params["wq"], params["wk"], params["wv"], params["wd"]
    bq, bk, bv, bd = params["bq"], params["bk"], params["bv"], params["bd"]
    cols = [_rot_cols(D, Dh, s) for s in range(H)]
    wbig = jnp.concatenate(
        [bdiag(wq)] + [bdiag(wk[:, c]) for c in cols]
        + [bdiag(wv[:, c]) for c in cols], axis=1).astype(matmul_dtype)
    bbig = jnp.concatenate(
        [rep(bq)] + [rep(bk[:, c]) for c in cols]
        + [rep(bv[:, c]) for c in cols], axis=1)                 # [1,(1+2H)*128] f32
    wd_bd = bdiag(wd).astype(matmul_dtype)                       # [128, 128]
    bd_rep = rep(bd)
    gamma_rep = rep(params["gamma"])
    beta_rep = rep(params["beta"])

    lane = np.arange(128)
    seg = jnp.asarray((lane[:, None] // Dh == lane[None, :] // Dh)
                      .astype(np.float32) / math.sqrt(Dh)).astype(matmul_dtype)
    mln = jnp.asarray((lane[:, None] // D == lane[None, :] // D)
                      .astype(np.float32) / D)                   # f32 (LN stays f32)

    kernel = make_self_attention_kernel(H, D, eps=eps, matmul_dtype=matmul_dtype)

    row_spec = pl.BlockSpec((TP, 128), lambda i: (i, 0))
    full = lambda r, c: pl.BlockSpec((r, c), lambda i: (0, 0))
    W = (1 + 2 * H) * 128

    out = pl.pallas_call(
        kernel,
        out_shape=jax.ShapeDtypeStruct((Np, 128), x.dtype),
        grid=(Np // TP,),
        in_specs=[
            row_spec,                        # x (row-packed, 128 lanes)
            full(128, W), full(1, W),        # fused QKV(+rotations) weights/biases
            full(128, 128), full(1, 128),    # Wd (block-diag), bd
            full(128, 128), full(128, 128),  # seg (scores), mln (LayerNorm)
            full(1, 128), full(1, 128),      # gamma, beta
        ],
        out_specs=row_spec,
        compiler_params=pltpu.CompilerParams(
            dimension_semantics=("parallel",)),
    )(x.reshape(Np, 128), wbig, bbig, wd_bd, bd_rep, seg, mln,
      gamma_rep, beta_rep)
    return out.reshape(N, D)


def ref_forward(x, params, *, num_heads, eps=1e-12):
    """Pure-JAX reference matching the PyTorch forward (eval mode)."""
    N, D = x.shape
    Dh = D // num_heads
    q = x @ params["wq"] + params["bq"][0]
    k = x @ params["wk"] + params["bk"][0]
    v = x @ params["wv"] + params["bv"][0]
    qh = q.reshape(N, num_heads, Dh)
    kh = k.reshape(N, num_heads, Dh)
    vh = v.reshape(N, num_heads, Dh)
    scores = jnp.einsum("nhd,ngd->nhg", qh, kh) / math.sqrt(Dh)
    probs = jax.nn.softmax(scores, axis=-1)
    ctx = jnp.einsum("nhg,ngd->nhd", probs, vh).reshape(N, D)
    hs = ctx @ params["wd"] + params["bd"][0]
    y = hs + x
    u = y.mean(-1, keepdims=True)
    s = ((y - u) ** 2).mean(-1, keepdims=True)
    return params["gamma"][0] * (y - u) / jnp.sqrt(s + eps) + params["beta"][0]


if __name__ == "__main__":
    num_heads = 4
    hidden = 32          # input_size == hidden_size (required by residual add)
    N = 1024             # rows; tile_n=256 -> grid of 4 parallel steps

    key = jax.random.PRNGKey(0)
    ks = jax.random.split(key, 9)
    std = 0.05
    params = {
        "wq": jax.random.normal(ks[0], (hidden, hidden), jnp.float32) * std,
        "bq": jax.random.normal(ks[1], (1, hidden), jnp.float32) * std,
        "wk": jax.random.normal(ks[2], (hidden, hidden), jnp.float32) * std,
        "bk": jax.random.normal(ks[3], (1, hidden), jnp.float32) * std,
        "wv": jax.random.normal(ks[4], (hidden, hidden), jnp.float32) * std,
        "bv": jax.random.normal(ks[5], (1, hidden), jnp.float32) * std,
        "wd": jax.random.normal(ks[6], (hidden, hidden), jnp.float32) * std,
        "bd": jax.random.normal(ks[7], (1, hidden), jnp.float32) * std,
        "gamma": jnp.ones((1, hidden), jnp.float32),   # LayerNorm.weight init
        "beta": jnp.zeros((1, hidden), jnp.float32),   # LayerNorm.bias init
    }
    x = jax.random.normal(ks[8], (N, hidden), jnp.float32)

    ref = ref_forward(x, params, num_heads=num_heads)

    # bf16 MXU-input path (default; recommended on v6e/v7x); loose tolerance.
    out_bf16 = self_attention_forward(x, params, num_heads=num_heads, tile_n=256)
    out_bf16 = jax.block_until_ready(out_bf16)
    if not jnp.allclose(out_bf16, ref, atol=5e-2, rtol=5e-2):
        raise AssertionError("Pallas kernel (bf16 matmul) mismatch vs reference")

    # f32 MXU-input path; tolerance leaves headroom for the approximate EUP
    # reciprocal and any MXU f32-pass rounding.
    out_f32 = self_attention_forward(x, params, num_heads=num_heads, tile_n=256,
                                     matmul_dtype=jnp.float32)
    out_f32 = jax.block_until_ready(out_f32)
    if not jnp.allclose(out_f32, ref, atol=1e-2, rtol=1e-2):
        raise AssertionError("Pallas kernel (f32 matmul) mismatch vs reference")

    print("KERNEL_OK")
</pallas_src>

<mosaic_0001>
module attributes {stable_mosaic.version = 11 : i64} {
  func.func @kernel(%arg0: i32, %arg1: memref<64x128xf32, #tpu.memory_space<vmem>>, %arg2: memref<128x1152xbf16, #tpu.memory_space<vmem>>, %arg3: memref<1x1152xf32, #tpu.memory_space<vmem>>, %arg4: memref<128x128xbf16, #tpu.memory_space<vmem>>, %arg5: memref<1x128xf32, #tpu.memory_space<vmem>>, %arg6: memref<128x128xbf16, #tpu.memory_space<vmem>>, %arg7: memref<128x128xf32, #tpu.memory_space<vmem>>, %arg8: memref<1x128xf32, #tpu.memory_space<vmem>>, %arg9: memref<1x128xf32, #tpu.memory_space<vmem>>, %arg10: memref<64x128xf32, #tpu.memory_space<vmem>>) attributes {dimension_semantics = [#tpu.dimension_semantics<parallel>], iteration_bounds = array<i64: 4>, scalar_prefetch = 0 : i64, scratch_operands = 0 : i64, tpu.core_type = #tpu.core_type<tc>, window_params = [{transform_indices = @transform_0, window_bounds = array<i64: 64, 128>}, {pipeline_mode = #tpu.pipeline_mode<synchronous>, transform_indices = @transform_1, window_bounds = array<i64: 128, 1152>}, {pipeline_mode = #tpu.pipeline_mode<synchronous>, transform_indices = @transform_2, window_bounds = array<i64: 1, 1152>}, {pipeline_mode = #tpu.pipeline_mode<synchronous>, transform_indices = @transform_3, window_bounds = array<i64: 128, 128>}, {pipeline_mode = #tpu.pipeline_mode<synchronous>, transform_indices = @transform_4, window_bounds = array<i64: 1, 128>}, {pipeline_mode = #tpu.pipeline_mode<synchronous>, transform_indices = @transform_5, window_bounds = array<i64: 128, 128>}, {pipeline_mode = #tpu.pipeline_mode<synchronous>, transform_indices = @transform_6, window_bounds = array<i64: 128, 128>}, {pipeline_mode = #tpu.pipeline_mode<synchronous>, transform_indices = @transform_7, window_bounds = array<i64: 1, 128>}, {pipeline_mode = #tpu.pipeline_mode<synchronous>, transform_indices = @transform_8, window_bounds = array<i64: 1, 128>}, {transform_indices = @transform_9, window_bounds = array<i64: 64, 128>}]} {
    %c0 = arith.constant 0 : index
    %c0_0 = arith.constant 0 : index
    %0 = vector.load %arg1[%c0, %c0_0] : memref<64x128xf32, #tpu.memory_space<vmem>>, vector<64x128xf32>
    %1 = arith.truncf %0 : vector<64x128xf32> to vector<64x128xbf16>
    %c0_1 = arith.constant 0 : index
    %c0_2 = arith.constant 0 : index
    %2 = vector.load %arg2[%c0_1, %c0_2] : memref<128x1152xbf16, #tpu.memory_space<vmem>>, vector<128x1152xbf16>
    %cst = arith.constant dense<0.000000e+00> : vector<64x1152xf32>
    %3 = tpu.matmul %1, %2, %cst {dimension_numbers = #tpu.dot_dimension_numbers<[1], [0], [0], [1], [0, 0, 1, 1], [], []>} : vector<64x128xbf16>, vector<128x1152xbf16>, vector<64x1152xf32> -> vector<64x1152xf32>
    %c0_3 = arith.constant 0 : index
    %c0_4 = arith.constant 0 : index
    %4 = vector.load %arg3[%c0_3, %c0_4] : memref<1x1152xf32, #tpu.memory_space<vmem>>, vector<1x1152xf32>
    %5 = vector.broadcast %4 : vector<1x1152xf32> to vector<64x1152xf32>
    %6 = arith.addf %3, %5 : vector<64x1152xf32>
    %7 = vector.extract_strided_slice %6 {offsets = [0, 0], sizes = [64, 128], strides = [1, 1]} : vector<64x1152xf32> to vector<64x128xf32>
    %c0_5 = arith.constant 0 : index
    %c0_6 = arith.constant 0 : index
    %8 = vector.load %arg6[%c0_5, %c0_6] : memref<128x128xbf16, #tpu.memory_space<vmem>>, vector<128x128xbf16>
    %9 = vector.extract_strided_slice %6 {offsets = [0, 128], sizes = [64, 128], strides = [1, 1]} : vector<64x1152xf32> to vector<64x128xf32>
    %10 = arith.mulf %7, %9 : vector<64x128xf32>
    %11 = arith.truncf %10 : vector<64x128xf32> to vector<64x128xbf16>
    %cst_7 = arith.constant dense<0.000000e+00> : vector<64x128xf32>
    %12 = tpu.matmul %11, %8, %cst_7 {dimension_numbers = #tpu.dot_dimension_numbers<[1], [0], [0], [1], [0, 0, 1, 1], [], []>} : vector<64x128xbf16>, vector<128x128xbf16>, vector<64x128xf32> -> vector<64x128xf32>
    %13 = vector.extract_strided_slice %6 {offsets = [0, 256], sizes = [64, 128], strides = [1, 1]} : vector<64x1152xf32> to vector<64x128xf32>
    %14 = arith.mulf %7, %13 : vector<64x128xf32>
    %15 = arith.truncf %14 : vector<64x128xf32> to vector<64x128xbf16>
    %cst_8 = arith.constant dense<0.000000e+00> : vector<64x128xf32>
    %16 = tpu.matmul %15, %8, %cst_8 {dimension_numbers = #tpu.dot_dimension_numbers<[1], [0], [0], [1], [0, 0, 1, 1], [], []>} : vector<64x128xbf16>, vector<128x128xbf16>, vector<64x128xf32> -> vector<64x128xf32>
    %17 = vector.extract_strided_slice %6 {offsets = [0, 384], sizes = [64, 128], strides = [1, 1]} : vector<64x1152xf32> to vector<64x128xf32>
    %18 = arith.mulf %7, %17 : vector<64x128xf32>
    %19 = arith.truncf %18 : vector<64x128xf32> to vector<64x128xbf16>
    %cst_9 = arith.constant dense<0.000000e+00> : vector<64x128xf32>
    %20 = tpu.matmul %19, %8, %cst_9 {dimension_numbers = #tpu.dot_dimension_numbers<[1], [0], [0], [1], [0, 0, 1, 1], [], []>} : vector<64x128xbf16>, vector<128x128xbf16>, vector<64x128xf32> -> vector<64x128xf32>
    %21 = vector.extract_strided_slice %6 {offsets = [0, 512], sizes = [64, 128], strides = [1, 1]} : vector<64x1152xf32> to vector<64x128xf32>
    %22 = arith.mulf %7, %21 : vector<64x128xf32>
    %23 = arith.truncf %22 : vector<64x128xf32> to vector<64x128xbf16>
    %cst_10 = arith.constant dense<0.000000e+00> : vector<64x128xf32>
    %24 = tpu.matmul %23, %8, %cst_10 {dimension_numbers = #tpu.dot_dimension_numbers<[1], [0], [0], [1], [0, 0, 1, 1], [], []>} : vector<64x128xbf16>, vector<128x128xbf16>, vector<64x128xf32> -> vector<64x128xf32>
    %25 = arith.maximumf %12, %16 : vector<64x128xf32>
    %26 = arith.maximumf %25, %20 : vector<64x128xf32>
    %27 = arith.maximumf %26, %24 : vector<64x128xf32>
    %28 = arith.subf %12, %27 : vector<64x128xf32>
    %29 = math.exp %28 : vector<64x128xf32>
    %30 = arith.subf %16, %27 : vector<64x128xf32>
    %31 = math.exp %30 : vector<64x128xf32>
    %32 = arith.subf %20, %27 : vector<64x128xf32>
    %33 = math.exp %32 : vector<64x128xf32>
    %34 = arith.subf %24, %27 : vector<64x128xf32>
    %35 = math.exp %34 : vector<64x128xf32>
    %36 = vector.extract_strided_slice %6 {offsets = [0, 640], sizes = [64, 128], strides = [1, 1]} : vector<64x1152xf32> to vector<64x128xf32>
    %37 = arith.mulf %29, %36 : vector<64x128xf32>
    %38 = arith.addf %29, %31 : vector<64x128xf32>
    %39 = vector.extract_strided_slice %6 {offsets = [0, 768], sizes = [64, 128], strides = [1, 1]} : vector<64x1152xf32> to vector<64x128xf32>
    %40 = arith.mulf %31, %39 : vector<64x128xf32>
    %41 = arith.addf %37, %40 : vector<64x128xf32>
    %42 = arith.addf %38, %33 : vector<64x128xf32>
    %43 = vector.extract_strided_slice %6 {offsets = [0, 896], sizes = [64, 128], strides = [1, 1]} : vector<64x1152xf32> to vector<64x128xf32>
    %44 = arith.mulf %33, %43 : vector<64x128xf32>
    %45 = arith.addf %41, %44 : vector<64x128xf32>
    %46 = arith.addf %42, %35 : vector<64x128xf32>
    %47 = vector.extract_strided_slice %6 {offsets = [0, 1024], sizes = [64, 128], strides = [1, 1]} : vector<64x1152xf32> to vector<64x128xf32>
    %48 = arith.mulf %35, %47 : vector<64x128xf32>
    %49 = arith.addf %45, %48 : vector<64x128xf32>
    %50 = tpu.reciprocal %46 {approx = true} : vector<64x128xf32> -> vector<64x128xf32>
    %51 = arith.mulf %49, %50 : vector<64x128xf32>
    %52 = arith.truncf %51 : vector<64x128xf32> to vector<64x128xbf16>
    %c0_11 = arith.constant 0 : index
    %c0_12 = arith.constant 0 : index
    %53 = vector.load %arg4[%c0_11, %c0_12] : memref<128x128xbf16, #tpu.memory_space<vmem>>, vector<128x128xbf16>
    %cst_13 = arith.constant dense<0.000000e+00> : vector<64x128xf32>
    %54 = tpu.matmul %52, %53, %cst_13 {dimension_numbers = #tpu.dot_dimension_numbers<[1], [0], [0], [1], [0, 0, 1, 1], [], []>} : vector<64x128xbf16>, vector<128x128xbf16>, vector<64x128xf32> -> vector<64x128xf32>
    %c0_14 = arith.constant 0 : index
    %c0_15 = arith.constant 0 : index
    %55 = vector.load %arg5[%c0_14, %c0_15] : memref<1x128xf32, #tpu.memory_space<vmem>>, vector<1x128xf32>
    %56 = vector.broadcast %55 : vector<1x128xf32> to vector<64x128xf32>
    %57 = arith.addf %54, %56 : vector<64x128xf32>
    %58 = arith.addf %57, %0 : vector<64x128xf32>
    %c0_16 = arith.constant 0 : index
    %c0_17 = arith.constant 0 : index
    %59 = vector.load %arg7[%c0_16, %c0_17] : memref<128x128xf32, #tpu.memory_space<vmem>>, vector<128x128xf32>
    %cst_18 = arith.constant dense<0.000000e+00> : vector<64x128xf32>
    %60 = tpu.matmul %58, %59, %cst_18 {dimension_numbers = #tpu.dot_dimension_numbers<[1], [0], [0], [1], [0, 0, 1, 1], [], []>} : vector<64x128xf32>, vector<128x128xf32>, vector<64x128xf32> -> vector<64x128xf32>
    %61 = arith.subf %58, %60 : vector<64x128xf32>
    %62 = arith.mulf %61, %61 : vector<64x128xf32>
    %cst_19 = arith.constant dense<0.000000e+00> : vector<64x128xf32>
    %63 = tpu.matmul %62, %59, %cst_19 {dimension_numbers = #tpu.dot_dimension_numbers<[1], [0], [0], [1], [0, 0, 1, 1], [], []>} : vector<64x128xf32>, vector<128x128xf32>, vector<64x128xf32> -> vector<64x128xf32>
    %cst_20 = arith.constant 9.99999996E-13 : f32
    %64 = vector.broadcast %cst_20 : f32 to vector<64x128xf32>
    %65 = arith.addf %63, %64 : vector<64x128xf32>
    %66 = math.rsqrt %65 : vector<64x128xf32>
    %67 = arith.mulf %61, %66 : vector<64x128xf32>
    %c0_21 = arith.constant 0 : index
    %c0_22 = arith.constant 0 : index
    %68 = vector.load %arg8[%c0_21, %c0_22] : memref<1x128xf32, #tpu.memory_space<vmem>>, vector<1x128xf32>
    %69 = vector.broadcast %68 : vector<1x128xf32> to vector<64x128xf32>
    %70 = arith.mulf %69, %67 : vector<64x128xf32>
    %c0_23 = arith.constant 0 : index
    %c0_24 = arith.constant 0 : index
    %71 = vector.load %arg9[%c0_23, %c0_24] : memref<1x128xf32, #tpu.memory_space<vmem>>, vector<1x128xf32>
    %72 = vector.broadcast %71 : vector<1x128xf32> to vector<64x128xf32>
    %73 = arith.addf %70, %72 : vector<64x128xf32>
    %c0_25 = arith.constant 0 : index
    %c0_26 = arith.constant 0 : index
    %74 = vector.load %arg10[%c0_25, %c0_26] : memref<64x128xf32, #tpu.memory_space<vmem>>, vector<64x128xf32>
    tpu.vector_store %arg10[%c0_25, %c0_26], %73 {strides = array<i32>} : memref<64x128xf32, #tpu.memory_space<vmem>>, vector<64x128xf32>,
    return
  }
  func.func @transform_0(%arg0: i32) -> (i32, i32) {
    %c0_i32 = arith.constant 0 : i32
    %c0_i32_0 = arith.constant 0 : i32
    return %arg0, %c0_i32 : i32, i32
  }
  func.func @transform_1(%arg0: i32) -> (i32, i32) {
    %c0_i32 = arith.constant 0 : i32
    %c0_i32_0 = arith.constant 0 : i32
    %c0_i32_1 = arith.constant 0 : i32
    return %c0_i32, %c0_i32_0 : i32, i32
  }
  func.func @transform_2(%arg0: i32) -> (i32, i32) {
    %c0_i32 = arith.constant 0 : i32
    %c0_i32_0 = arith.constant 0 : i32
    %c0_i32_1 = arith.constant 0 : i32
    return %c0_i32, %c0_i32_0 : i32, i32
  }
  func.func @transform_3(%arg0: i32) -> (i32, i32) {
    %c0_i32 = arith.constant 0 : i32
    %c0_i32_0 = arith.constant 0 : i32
    %c0_i32_1 = arith.constant 0 : i32
    return %c0_i32, %c0_i32_0 : i32, i32
  }
  func.func @transform_4(%arg0: i32) -> (i32, i32) {
    %c0_i32 = arith.constant 0 : i32
    %c0_i32_0 = arith.constant 0 : i32
    %c0_i32_1 = arith.constant 0 : i32
    return %c0_i32, %c0_i32_0 : i32, i32
  }
  func.func @transform_5(%arg0: i32) -> (i32, i32) {
    %c0_i32 = arith.constant 0 : i32
    %c0_i32_0 = arith.constant 0 : i32
    %c0_i32_1 = arith.constant 0 : i32
    return %c0_i32, %c0_i32_0 : i32, i32
  }
  func.func @transform_6(%arg0: i32) -> (i32, i32) {
    %c0_i32 = arith.constant 0 : i32
    %c0_i32_0 = arith.constant 0 : i32
    %c0_i32_1 = arith.constant 0 : i32
    return %c0_i32, %c0_i32_0 : i32, i32
  }
  func.func @transform_7(%arg0: i32) -> (i32, i32) {
    %c0_i32 = arith.constant 0 : i32
    %c0_i32_0 = arith.constant 0 : i32
    %c0_i32_1 = arith.constant 0 : i32
    return %c0_i32, %c0_i32_0 : i32, i32
  }
  func.func @transform_8(%arg0: i32) -> (i32, i32) {
    %c0_i32 = arith.constant 0 : i32
    %c0_i32_0 = arith.constant 0 : i32
    %c0_i32_1 = arith.constant 0 : i32
    return %c0_i32, %c0_i32_0 : i32, i32
  }
  func.func @transform_9(%arg0: i32) -> (i32, i32) {
    %c0_i32 = arith.constant 0 : i32
    %c0_i32_0 = arith.constant 0 : i32
    return %arg0, %c0_i32 : i32, i32
  }
}

</mosaic_0001>

<bundles_post_ra>
// kernel: tpu_custom_call.1
= control target key start
LH: loop header
LB: loop body
LE: loop exit
PB: predicated region body
PF: predicated region fallthrough
CT: control target
= control target key end

     0   :  { %s4505_s0 = inlined_call_operand.hbm [shape: f32[256,128], index: 0, kind: input, shape index: {}]   ;;  %s4506_s1 = inlined_call_operand.hbm [shape: bf16[128,1152], index: 1, kind: input, shape index: {}]   ;;  %s4507_s2 = inlined_call_operand.hbm [shape: f32[1,1152], index: 2, kind: input, shape index: {}]   ;;  %s4508_s3 = inlined_call_operand.hbm [shape: bf16[128,128], index: 3, kind: input, shape index: {}]   ;;  %s4509_s4 = inlined_call_operand.vmem [shape: f32[1,128], index: 4, kind: input, shape index: {}]   ;;  %s4510_s5 = inlined_call_operand.hbm [shape: bf16[128,128], index: 5, kind: input, shape index: {}]   ;;  %s4511_s6 = inlined_call_operand.hbm [shape: f32[128,128], index: 6, kind: input, shape index: {}]   ;;  %s4512_s7 = inlined_call_operand.vmem [shape: f32[1,128], index: 7, kind: input, shape index: {}]   ;;  %s4513_s8 = inlined_call_operand.vmem [shape: f32[1,128], index: 8, kind: input, shape index: {}]   ;;  %s4514_s9 = inlined_call_operand.hbm [shape: f32[256,128], index: 9, kind: output, shape index: {}]  }
   0x1   :  { %4547 = sst [smem:[#allocation43_spill]] %s4506_s1 }
   0x2   :  { %4548 = sst [smem:[#allocation44_spill]] %s4507_s2 }
   0x3   :  { %4549 = sst [smem:[#allocation45_spill]] %s4508_s3 }
   0x4   :  { %14 = vsyncpa [#allocation3], 0 }
   0x5   :  { %16 = vsyncpa [#allocation3 + $0x1], 0 }
   0x6   :  { %17 = vsyncpa [#allocation6], 0 }
   0x7   :  { %18 = vsyncpa [#allocation9], 0 }
   0x8   :  { %19 = vsyncpa [#allocation12], 0 }
   0x9   :  { %20 = vsyncpa [#allocation4], 0 }
   0xa   :  { %22 = vsyncpa [#allocation4 + $0x1], 0  ;;  %s3560_s30 = smov 0   ;;  %s3562_s10 = smov 0  }
   0xb   :  { %s3564_s11 = smov 0   ;;  %s3566_s12 = smov 0  }
   0xc LB: > { %s3494_s13 = smov [#allocation5]   ;;  %s3581_s15 = sadd.s32 4294967295, %s3492_s12   ;;  %s3492_s12 = sphi %s3566_s12, %s4623_s12   ;;  %s3488_s11 = sphi %s3564_s11, %s4622_s11   ;;  %s3484_s10 = sphi %s3562_s10, %s4621_s10   ;;  %s3480_s30 = sphi %s3560_s30, %s4620_s30  }
   0xd   : > { %s265_s14 = sshll.u32 %s3494_s13, 4  ;;  %p2459_p0 = scmp.ge.s32.totalorder %s3492_s12, 1  ;;  %s266_s14 = int_to_ptr.vmem [resolvable:$true] %s265_s14 }
   0xe   : > { %p4517_p1 = scmp.eq.s32.totalorder %s3581_s15, 0  ;;  %p253_p2 = scmp.lt.s32.totalorder %s3492_s12, 5 }
   0xf   : > { %s3495_s17 = smov [#allocation8]   ;;  %s3496_s20 = smov [#allocation7]  }
  0x10   : > { %p3586_p3 = pnand %p2459_p0, %p253_p2  ;;  %s289_s18 = sshll.u32 %s3495_s17, 4  ;;  %s3598_s18 = int_to_ptr.vmem [resolvable:$true] %s289_s18 }
  0x11   : > { %s3600_s21 = sshll.u32 %s3496_s20, 4  ;;  %s3269_s23 = scalar_lea.vmem %s266_s14, 9216  ;;  %s280_s21 = int_to_ptr.vmem [resolvable:$true] %s3600_s21 }
  0x12   : > { %s4550_s16 = scalar_select %p3586_p3, 1, 0 }
  0x13   : > { %p2952_p4 = pneg %p3586_p3  ;;  %p3270_p7 = scmp.ne.s32.totalorder %s266_s14, %s3269_s23 }
  0x14   : > { %p3277_p10 = scmp.lt.s32.totalorder %s266_s14, %s266_s14  ;;  %p3278_p11 = scmp.lt.s32.totalorder %s3269_s23, %s3269_s23 }
  0x15   : > { %p3594_p5 = pnand %p2952_p4, %p4517_p1 }
  0x16   : > { %p3279_p12 = por %p3278_p11, %p3277_p10 }
  0x17   : > { %p3604_p6 = pneg %p3594_p5 }
  0x19   : > { %p3272_p8 = pnand %p3270_p7, %p3604_p6 }
  0x1b   : > { %p3273_p9 = pneg %p3272_p8 }
  0x1d   : > { %p3280_p13 = pnand %p3279_p12, %p3273_p9 }
  0x1f   : > { %3283 = shalt.err (!%p3280_p13)
}
  0x20   : > { %s3497_s24 = smov 576   ;;  %s3498_s25 = smov 36  }
  0x21   : > { %s4553_s1 = sld [smem:[#allocation43_spill]]  ;;  %s3295_s28 = scalar_lea.vmem %s3598_s18, 1024 }
  0x22   : > { %p3296_p0 = scmp.ne.s32.totalorder %s3598_s18, %s3295_s28  ;;  %p3303_p7 = scmp.lt.s32.totalorder %s3598_s18, %s3598_s18 }
  0x23   : > { %p3304_p8 = scmp.lt.s32.totalorder %s3295_s28, %s3295_s28 }
  0x24   : > { %p3298_p2 = pnand %p3296_p0, %p3604_p6 }
  0x25   : > { %p3305_p9 = por %p3304_p8, %p3303_p7 }
  0x26   : > { %p3299_p4 = pneg %p3298_p2 }
  0x27   : > { %2955 = dma.hbm_to_vmem [thread:$0]  (!%p3594_p5), %s4553_s1, 9216, %s266_s14, [#allocation6], %s3497_s24, %s3497_s24, %s3498_s25  }
  0x28   : > { %p3306_p10 = pnand %p3305_p9, %p3299_p4 }
  0x2a   : > { %3309 = shalt.err (!%p3306_p10)
}
  0x2b   : > { %s3499_s29 = smov 64   ;;  %s3500_s13 = smov 4  }
  0x2c   : > { %s4554_s3 = sld [smem:[#allocation45_spill]]  ;;  %s3321_s20 = scalar_lea.vmem %s280_s21, 144 }
  0x2d   : > { %p3322_p11 = scmp.ne.s32.totalorder %s280_s21, %s3321_s20  ;;  %s3328_s23 = scalar_lea.vmem %s280_s21, 160 }
  0x2e   : > { %p3329_p0 = scmp.lt.s32.totalorder %s280_s21, %s280_s21  ;;  %p3330_p2 = scmp.lt.s32.totalorder %s3328_s23, %s3321_s20 }
  0x2f   : > { %p3324_p12 = pnand %p3322_p11, %p3604_p6 }
  0x30   : > { %p3331_p4 = por %p3330_p2, %p3329_p0 }
  0x31   : > { %p3325_p13 = pneg %p3324_p12 }
  0x32   : > { %2961 = dma.hbm_to_vmem [thread:$0]  (!%p3594_p5), %s4554_s3, 1024, %s3598_s18, [#allocation9], %s3499_s29, %s3499_s29, %s3500_s13  }
  0x33   : > { %p3332_p7 = pnand %p3331_p4, %p3325_p13 }
  0x35   : > { %3335 = shalt.err (!%p3332_p7)
}
  0x36   : > { %s4555_s2 = sld [smem:[#allocation44_spill]]  ;;  %s3501_s18 = smov [#allocation10]  }
  0x37   : > { %s305_s26 = sshll.u32 %s3501_s18, 4  ;;  %s3502_s27 = smov [#allocation11]   ;;  %s306_s26 = int_to_ptr.vmem [resolvable:$true] %s305_s26 }
  0x38   : > { %s318_s28 = sshll.u32 %s3502_s27, 4  ;;  %s3347_s14 = scalar_lea.vmem %s306_s26, 1024  ;;  %s319_s28 = int_to_ptr.vmem [resolvable:$true] %s318_s28 }
  0x39   : > { %p3348_p8 = scmp.ne.s32.totalorder %s306_s26, %s3347_s14  ;;  %p3355_p11 = scmp.lt.s32.totalorder %s306_s26, %s306_s26 }
  0x3a   : > { %p3356_p12 = scmp.lt.s32.totalorder %s3347_s14, %s3347_s14 }
  0x3b   : > { %p3350_p9 = pnand %p3348_p8, %p3604_p6 }
  0x3c   : > { %2958 = dma.hbm_to_vmem [thread:$0]  (!%p3594_p5), %s4555_s2, 144, %s280_s21, [#allocation6]  }
  0x3d   : > { %p3351_p10 = pneg %p3350_p9  ;;  %p3357_p13 = por %p3356_p12, %p3355_p11 }
  0x3f   : > { %p3358_p0 = pnand %p3357_p13, %p3351_p10 }
  0x41   : > { %3361 = shalt.err (!%p3358_p0)
}
  0x42   : > { %2964 = dma.hbm_to_vmem [thread:$0]  (!%p3594_p5), %s4510_s5, 1024, %s306_s26, [#allocation9], %s3499_s29, %s3499_s29, %s3500_s13  }
  0x43   : > { %s3373_s20 = scalar_lea.vmem %s319_s28, 2048  ;;  %p3381_p8 = scmp.lt.s32.totalorder %s319_s28, %s319_s28 }
  0x44   : > { %p3374_p2 = scmp.ne.s32.totalorder %s319_s28, %s3373_s20  ;;  %p3382_p9 = scmp.lt.s32.totalorder %s3373_s20, %s3373_s20 }
  0x46   : > { %p3376_p4 = pnand %p3374_p2, %p3604_p6  ;;  %p3383_p10 = por %p3382_p9, %p3381_p8 }
  0x48   : > { %p3377_p7 = pneg %p3376_p4 }
  0x4a   : > { %p3384_p11 = pnand %p3383_p10, %p3377_p7 }
  0x4c   : > { %3387 = shalt.err (!%p3384_p11)
}
  0x4d   : > { %s4515_s23 = smov 128   ;;  %s4516_s22 = smov 8  }
  0x4e   : > { %2967 = dma.hbm_to_vmem [thread:$0]  (!%p3594_p5), %s4511_s6, 2048, %s319_s28, [#allocation12], %s4515_s23, %s4515_s23, %s4516_s22  }
  0x4f   : > { %s2458_s24 = sadd.s32 4294967294, %s3492_s12   ;;  %s3660_s25 = sadd.s32 1, %s3492_s12  }
  0x50   : > { %s35_s18 = sadd.s32 1, %s3488_s11  ;;  %s32_s26 = ssub.s32 %s3492_s12, %s3660_s25 }
  0x51   : > { %p42_p6 = scmp.ne.s32.totalorder %s3488_s11, %s3484_s10  ;;  %p33_p12 = scmp.eq.s32.totalorder %s32_s26, 0 }
  0x52   : > { %p43_p13 = scmp.eq.s32.totalorder %s3492_s12, 0  ;;  %p48_p0 = scmp.ne.s32.totalorder %s3484_s10, %s3480_s30 }
  0x53   : > { %p240_p2 = scmp.eq.s32.totalorder %s3581_s15, 3  ;;  %p246_p8 = scmp.eq.s32.totalorder %s2458_s24, 3 }
  0x54   : > { %s3672_s19 = scalar_select %p33_p12, %s3488_s11, %s35_s18  }
  0x55   : > { %p44_p4 = por %p43_p13, %p42_p6  ;;  %p3676_p7 = por %p4517_p1, %p48_p0 }
  0x56   : > { %p3680_p5 = por %p240_p2, %p42_p6  ;;  %p2981_p9 = scmp.lt.s32.totalorder %s3492_s12, 4 }
  0x57   : > { %s4556_s27 = scalar_select %p3676_p7, 1, 0 }
  0x58   : > { %s4557_s28 = scalar_select %p3680_p5, 1, 0 }
  0x59   : > { %s338_s14 = sand.u32 1, %s3488_s11   ;;  %p3686_p10 = por %p246_p8, %p48_p0 }
  0x5a   : > { %s2466_s17 = sshll.u32 %s338_s14, 6  ;;  %s2574_s20 = sshll.u32 %s3492_s12, 10 }
  0x5b   : > { %s4558_s21 = scalar_select %p3686_p10, 1, 0 }
  0x5c   : > { %s3694_s18 = scalar_lea.hbm %s4505_s0, %s2574_s20  ;;  %s342_s26 = scalar_lea.vmem [#allocation2], %s2466_s17 }
  0x5d   : > { %s349_s23 = sshll.u32 %s342_s26, 4  ;;  %p3696_p11 = pnand %p2981_p9, %p44_p4  ;;  %s3700_s23 = int_to_ptr.vmem [resolvable:$true] %s349_s23 }
  0x5e   : > { %s3702_s22 = scalar_lea.sflag [#allocation3], %s338_s14  ;;  %s3388_s1 = scalar_lea.hbm %s3694_s18, 1024 }
  0x5f   : > { %p3389_p6 = scmp.ne.s32.totalorder %s3694_s18, %s3388_s1  ;;  %p3390_p12 = pneg %p3696_p11 }
  0x60   : > { %s3393_s17 = scalar_lea.hbm %s4505_s0, 4096  ;;  %p3394_p2 = scmp.lt.s32.totalorder %s3694_s18, %s4505_s0 }
  0x61   : > { %p3391_p13 = pnand %p3390_p12, %p3389_p6  ;;  %p3395_p4 = scmp.lt.s32.totalorder %s3393_s17, %s3388_s1 }
  0x63   : > { %p3392_p0 = pneg %p3391_p13  ;;  %p3396_p8 = por %p3395_p4, %p3394_p2 }
  0x65   : > { %p3397_p9 = pnand %p3396_p8, %p3392_p0 }
  0x67   : > { %3400 = shalt.err (!%p3397_p9)
}
  0x68   : > { %s3401_s14 = scalar_lea.vmem %s3700_s23, 1024  ;;  %s3505_s2 = smov [#allocation2]  }
  0x69   : > { %p3402_p1 = scmp.ne.s32.totalorder %s3700_s23, %s3401_s14  ;;  %s3406_s3 = sshll.u32 %s3505_s2, 4  ;;  %s3407_s3 = int_to_ptr.vmem [resolvable:$false] %s3406_s3 }
  0x6a   : > { %s3408_s20 = scalar_lea.vmem %s3407_s3, 2048  ;;  %p3409_p13 = scmp.lt.s32.totalorder %s3700_s23, %s3407_s3 }
  0x6b   : > { %p3404_p10 = pnand %p3402_p1, %p3390_p12  ;;  %p3410_p5 = scmp.lt.s32.totalorder %s3408_s20, %s3401_s14 }
  0x6d   : > { %p3405_p6 = pneg %p3404_p10  ;;  %p3411_p7 = por %p3410_p5, %p3409_p13 }
  0x6f   : > { %p3412_p3 = pnand %p3411_p7, %p3405_p6 }
  0x71   : > { %3415 = shalt.err (!%p3412_p3)
}
  0x72   : > { %s4560_s1 = smov 8   ;;  %s4561_s29 = smov 128  }
  0x73   : > { %2971 = dma.hbm_to_vmem [thread:$0]  (!%p3696_p11), %s3694_s18, 1024, %s3700_s23, %s3702_s22, %s4561_s29, %s4561_s29, %s4560_s1  }
  0x74   : > { %p4562_p1 = scmp.ne.s32.totalorder %s4550_s16, 0 }
  0x76   : > { %361 = sbr.rel (%p4562_p1) target bundleno = 1326 (0x52e), region = 56 }
  0x7b   : > { %s3729_s2 = sand.u32 1, %s3484_s10   ;;  %p4563_p3 = scmp.ne.s32.totalorder %s4556_s27, 0 }
  0x7c   : > { %s2470_s3 = sshll.u32 %s3729_s2, 6  ;;  %s364_s17 = scalar_lea.sflag [#allocation3], %s3729_s2 }
  0x7d   : > { %s3735_s24 = scalar_lea.vmem [#allocation2], %s2470_s3 }
  0x7e   : > { %3459 = dma.done.wait (%p4563_p3), %s364_s17, 1024  }
  0x7f   : > { %3461 = vsyncadd (%p4563_p3), %s364_s17, 4294966272  ;;  %p4564_p7 = scmp.eq.s32.totalorder %s3581_s15, 0 }
  0x81   : > { %3463 = dma.done.wait (%p4564_p7), [#allocation6], 9360   ;;  %p4565_p5 = pmov %p4564_p7 }
  0x83   : > { %3465 = vsyncadd (%p4565_p5), [#allocation6], 4294957936  ;;  %p4566_p10 = pmov %p4565_p5 }
  0x84   : > { %p4567_p11 = pmov %p4565_p5 }
  0x85   : > { %3467 = dma.done.wait (%p4566_p10), [#allocation9], 2048  }
  0x86   : > { %3469 = vsyncadd (%p4567_p11), [#allocation9], 4294965248  ;;  %p4568_p12 = pmov %p4565_p5 }
  0x87   : > { %p4569_p0 = pmov %p4565_p5 }
  0x88   : > { %3471 = dma.done.wait (%p4568_p12), [#allocation12], 2048  }
  0x89   : > { %3473 = vsyncadd (%p4569_p0), [#allocation12], 4294965248  ;;  %v3506_v0 = vmov 0   ;;  %v3034_v1 = vld [vmem:[#allocation5 + $0x1fc] ss:$36 sps:$4 sm:$0xff]   ;;  %v426_v34 = vld [vmem:[%s3735_s24 + $0x8] sm:$0xff] }
  0x8a   : > { %966 = vmatprep.mubr.bf16.mxu0 %v3506_v0  ;;  %1039 = vmatprep.mubr.bf16.mxu1 %v3506_v0  ;;  %v3036_v2 = vld [vmem:[#allocation5 + $0x204] ss:$36 sps:$4 sm:$0xff]   ;;  %v3038_v3 = vld [vmem:[#allocation5 + $0x1f8] ss:$36 sps:$4 sm:$0xff]   ;;  %v3044_v7 = vld [vmem:[#allocation5 + $0x1b0] ss:$36 sps:$4 sm:$0xff]  }
  0x8b   : > { %934 = vmatprep.subr.bf16.mxu0 %v3034_v1  ;;  %v3039_v4 = vld [vmem:[#allocation5 + $0x200] ss:$36 sps:$4 sm:$0xff]   ;;  %1007 = vmatprep.subr.bf16.mxu1 %v3036_v2  ;;  %v3040_v5 = vld [vmem:[#allocation5 + $0x1b4] ss:$36 sps:$4 sm:$0xff]   ;;  %v3046_v9 = vld [vmem:[#allocation5 + $0x16c] ss:$36 sps:$4 sm:$0xff]  }
  0x8c   : > { %935 = vmatpush1.bf16.msra.mxu0 %v3038_v3  ;;  %1008 = vmatpush1.bf16.msra.mxu1 %v3039_v4  ;;  %v3042_v6 = vld [vmem:[#allocation5 + $0x1bc] ss:$36 sps:$4 sm:$0xff]   ;;  %v3048_v10 = vld [vmem:[#allocation5 + $0x174] ss:$36 sps:$4 sm:$0xff]   ;;  %v3050_v11 = vld [vmem:[#allocation5 + $0x168] ss:$36 sps:$4 sm:$0xff]  }
  0x8d   : > { %936 = vmatprep.subr.bf16.mxu0 %v3040_v5  ;;  %v3045_v8 = vld [vmem:[#allocation5 + $0x1b8] ss:$36 sps:$4 sm:$0xff]   ;;  %1009 = vmatprep.subr.bf16.mxu1 %v3042_v6  ;;  %v3051_v12 = vld [vmem:[#allocation5 + $0x170] ss:$36 sps:$4 sm:$0xff]   ;;  %v3052_v13 = vld [vmem:[#allocation5 + $0x124] ss:$36 sps:$4 sm:$0xff]  }
  0x8e   : > { %v3054_v14 = vld [vmem:[#allocation5 + $0x12c] ss:$36 sps:$4 sm:$0xff]   ;;  %v3056_v15 = vld [vmem:[#allocation5 + $0x120] ss:$36 sps:$4 sm:$0xff]   ;;  %v3062_v19 = vld [vmem:[#allocation5 + $0xd8] ss:$36 sps:$4 sm:$0xff]  }
  0x8f   : > { %v3057_v16 = vld [vmem:[#allocation5 + $0x128] ss:$36 sps:$4 sm:$0xff]   ;;  %v3058_v17 = vld [vmem:[#allocation5 + $0xdc] ss:$36 sps:$4 sm:$0xff]   ;;  %v3064_v21 = vld [vmem:[#allocation5 + $0x94] ss:$36 sps:$4 sm:$0xff]  }
  0x90   : > { %937 = vmatpush1.bf16.msra.mxu0 %v3044_v7  ;;  %1010 = vmatpush1.bf16.msra.mxu1 %v3045_v8  ;;  %v3060_v18 = vld [vmem:[#allocation5 + $0xe4] ss:$36 sps:$4 sm:$0xff]   ;;  %v3066_v22 = vld [vmem:[#allocation5 + $0x9c] ss:$36 sps:$4 sm:$0xff]   ;;  %v3068_v23 = vld [vmem:[#allocation5 + $0x90] ss:$36 sps:$4 sm:$0xff]  }
  0x91   : > { %938 = vmatprep.subr.bf16.mxu0 %v3046_v9  ;;  %1011 = vmatprep.subr.bf16.mxu1 %v3048_v10  ;;  %v3063_v20 = vld [vmem:[#allocation5 + $0xe0] ss:$36 sps:$4 sm:$0xff]   ;;  %v3069_v24 = vld [vmem:[#allocation5 + $0x98] ss:$36 sps:$4 sm:$0xff]   ;;  %v3070_v25 = vld [vmem:[#allocation5 + $0x4c] ss:$36 sps:$4 sm:$0xff]  }
  0x92   : > { %v3072_v26 = vld [vmem:[#allocation5 + $0x54] ss:$36 sps:$4 sm:$0xff]   ;;  %v3074_v27 = vld [vmem:[#allocation5 + $0x48] ss:$36 sps:$4 sm:$0xff]   ;;  %v3080_v31 = vld [vmem:[#allocation5] ss:$36 sps:$4 sm:$0xff]  }
  0x93   : > { %v3075_v28 = vld [vmem:[#allocation5 + $0x50] ss:$36 sps:$4 sm:$0xff]   ;;  %v3076_v29 = vld [vmem:[#allocation5 + $0x4] ss:$36 sps:$4 sm:$0xff]   ;;  %v428_v41 = vld [vmem:[%s3735_s24 + $0x18] sm:$0xff]  ;;  %s4442_s26 = scalar_lea.vmem [#allocation13], %s2470_s3 }
  0x94   : > { %939 = vmatpush1.bf16.msra.mxu0 %v3050_v11  ;;  %1012 = vmatpush1.bf16.msra.mxu1 %v3051_v12  ;;  %v3078_v30 = vld [vmem:[#allocation5 + $0xc] ss:$36 sps:$4 sm:$0xff]   ;;  %v425_v33 = vld [vmem:[%s3735_s24] sm:$0xff]  ;;  %v3109_v43 = vld [vmem:[#allocation5 + $0x214] ss:$36 sps:$4 sm:$0xff]   ;;  %s2575_s14 = sshll.u32 %s3581_s15, 10 }
  0x95   : > { %940 = vmatprep.subr.bf16.mxu0 %v3052_v13  ;;  %1013 = vmatprep.subr.bf16.mxu1 %v3054_v14  ;;  %v3081_v32 = vld [vmem:[#allocation5 + $0x8] ss:$36 sps:$4 sm:$0xff]   ;;  %v3757_v36 = vpack.c.bf16 %v426_v34, %v425_v33  ;;  %v3085_v39 = vld [vmem:[#allocation5 + $0x1c0] ss:$36 sps:$4 sm:$0xff]   ;;  %v427_v40 = vld [vmem:[%s3735_s24 + $0x10] sm:$0xff]  ;;  %s2337_s20 = sshll.u32 %s4442_s26, 4  ;;  %s4459_s3 = scalar_lea.hbm %s4514_s9, %s2575_s14  ;;  %s4461_s20 = int_to_ptr.vmem [resolvable:$true] %s2337_s20 }
  0x96   : > { %v3084_v35 = vld [vmem:[#allocation5 + $0x20c] ss:$36 sps:$4 sm:$0xff]   ;;  %v3087_v38 = vld [vmem:[#allocation5 + $0x1c4] ss:$36 sps:$4 sm:$0xff]   ;;  %v3090_v44 = vld [vmem:[#allocation5 + $0x17c] ss:$36 sps:$4 sm:$0xff]   ;;  %v3765_v45 = vpack.c.bf16 %v428_v41, %v427_v40 }
  0x97   : > { %v3082_v37 = vld [vmem:[#allocation5 + $0x208] ss:$36 sps:$4 sm:$0xff]   ;;  %v3107_v42 = vld [vmem:[#allocation5 + $0x210] ss:$36 sps:$4 sm:$0xff]   ;;  %v3088_v47 = vld [vmem:[#allocation5 + $0x178] ss:$36 sps:$4 sm:$0xff]  }
  0x98   : > { %941 = vmatpush1.bf16.msra.mxu0 %v3056_v15  ;;  %1014 = vmatpush1.bf16.msra.mxu1 %v3057_v16  ;;  %v3113_v46 = vld [vmem:[#allocation5 + $0x1cc] ss:$36 sps:$4 sm:$0xff]   ;;  %v3093_v48 = vld [vmem:[#allocation5 + $0x134] ss:$36 sps:$4 sm:$0xff]   ;;  %v429_v51 = vld [vmem:[%s3735_s24 + $0x20] sm:$0xff]  ;;  %s2324_s17 = scalar_lea.sflag [#allocation4], %s3729_s2 }
  0x99   : > { %942 = vmatprep.subr.bf16.mxu0 %v3058_v17  ;;  %1015 = vmatprep.subr.bf16.mxu1 %v3060_v18  ;;  %v3091_v49 = vld [vmem:[#allocation5 + $0x130] ss:$36 sps:$4 sm:$0xff]   ;;  %v3111_v50 = vld [vmem:[#allocation5 + $0x1c8] ss:$36 sps:$4 sm:$0xff]   ;;  %v3115_v55 = vld [vmem:[#allocation5 + $0x180] ss:$36 sps:$4 sm:$0xff]  }
  0x9a   : > { %v3117_v52 = vld [vmem:[#allocation5 + $0x184] ss:$36 sps:$4 sm:$0xff]   ;;  %v3096_v54 = vld [vmem:[#allocation5 + $0xec] ss:$36 sps:$4 sm:$0xff]   ;;  %v432_v61 = vld [vmem:[%s3735_s24 + $0x38] sm:$0xff]  ;;  %p4618_p4 = scmp.ne.s32.totalorder %s4557_s28, 0 }
  0x9b   : > { %v430_v53 = vld [vmem:[%s3735_s24 + $0x28] sm:$0xff]  ;;  %v3097_v59 = vld [vmem:[#allocation5 + $0xa0] ss:$36 sps:$4 sm:$0xff]   ;;  %v431_v60 = vld [vmem:[%s3735_s24 + $0x30] sm:$0xff]  ;;  %s3507_s15 = smov [#allocation13]  }
  0x9c   : > { %943 = vmatpush1.bf16.msra.mxu0 %v3062_v19  ;;  %1016 = vmatpush1.bf16.msra.mxu1 %v3063_v20  ;;  %v3773_v56 = vpack.c.bf16 %v430_v53, %v429_v51  ;;  %v3094_v57 = vld [vmem:[#allocation5 + $0xe8] ss:$36 sps:$4 sm:$0xff]   ;;  %v3121_v62 = vld [vmem:[#allocation5 + $0x13c] ss:$36 sps:$4 sm:$0xff]   ;;  %v3125_v1 = vld [vmem:[#allocation5 + $0xf4] ss:$36 sps:$4 sm:$0xff]   ;;  %v3781_v3 = vpack.c.bf16 %v432_v61, %v431_v60 }
  0x9d   : > { %944 = vmatprep.subr.bf16.mxu0 %v3064_v21  ;;  %1017 = vmatprep.subr.bf16.mxu1 %v3066_v22  ;;  %v3099_v58 = vld [vmem:[#allocation5 + $0xa4] ss:$36 sps:$4 sm:$0xff]   ;;  %v3119_v63 = vld [vmem:[#allocation5 + $0x138] ss:$36 sps:$4 sm:$0xff]   ;;  %v3123_v6 = vld [vmem:[#allocation5 + $0xf0] ss:$36 sps:$4 sm:$0xff]  }
  0x9e   : > { %v3102_v2 = vld [vmem:[#allocation5 + $0x5c] ss:$36 sps:$4 sm:$0xff]   ;;  %v3105_v5 = vld [vmem:[#allocation5 + $0x14] ss:$36 sps:$4 sm:$0xff]   ;;  %v3129_v7 = vld [vmem:[#allocation5 + $0xac] ss:$36 sps:$4 sm:$0xff]  }
  0x9f   : > { %v3100_v4 = vld [vmem:[#allocation5 + $0x58] ss:$36 sps:$4 sm:$0xff]   ;;  %v3103_v8 = vld [vmem:[#allocation5 + $0x10] ss:$36 sps:$4 sm:$0xff]   ;;  %v3127_v10 = vld [vmem:[#allocation5 + $0xa8] ss:$36 sps:$4 sm:$0xff]  }
  0xa0   : > { %945 = vmatpush1.bf16.msra.mxu0 %v3068_v23  ;;  %1018 = vmatpush1.bf16.msra.mxu1 %v3069_v24  ;;  %v3106_v9 = vld [vmem:[#allocation5 + $0x218] ss:$36 sps:$4 sm:$0xff]   ;;  %v3133_v11 = vld [vmem:[#allocation5 + $0x64] ss:$36 sps:$4 sm:$0xff]   ;;  %v3110_v12 = vld [vmem:[#allocation5 + $0x1d0] ss:$36 sps:$4 sm:$0xff]  }
  0xa1   : > { %946 = vmatprep.subr.bf16.mxu0 %v3070_v25  ;;  %1019 = vmatprep.subr.bf16.mxu1 %v3072_v26  ;;  %v3131_v13 = vld [vmem:[#allocation5 + $0x60] ss:$36 sps:$4 sm:$0xff]   ;;  %v3114_v15 = vld [vmem:[#allocation5 + $0x188] ss:$36 sps:$4 sm:$0xff]   ;;  %v3135_v16 = vld [vmem:[#allocation5 + $0x18] ss:$36 sps:$4 sm:$0xff]  }
  0xa2   : > { %v3137_v14 = vld [vmem:[#allocation5 + $0x1c] ss:$36 sps:$4 sm:$0xff]   ;;  %v3800_v21 = vld [vmem:[#allocation10 + $0x28] sm:$0xff]   ;;  %v3805_v23 = vld [vmem:[#allocation10 + $0x20] sm:$0xff]   ;;  %s3420_s16 = sshll.u32 %s3507_s15, 4  ;;  %s3421_s16 = int_to_ptr.vmem [resolvable:$false] %s3420_s16 }
  0xa3   : > { %v3789_v17 = vld [vmem:[#allocation10 + $0x38] sm:$0xff]   ;;  %v3793_v19 = vld [vmem:[#allocation10 + $0x30] sm:$0xff]   ;;  %v3126_v22 = vld [vmem:[#allocation5 + $0xb0] ss:$36 sps:$4 sm:$0xff]   ;;  %s3422_s23 = scalar_lea.vmem %s3421_s16, 2048  ;;  %p3423_p6 = scmp.lt.s32.totalorder %s4461_s20, %s3421_s16 }
  0xa4   : > { %947 = vmatpush1.bf16.msra.mxu0 %v3074_v27  ;;  %1020 = vmatpush1.bf16.msra.mxu1 %v3075_v28  ;;  %v3118_v18 = vld [vmem:[#allocation5 + $0x140] ss:$36 sps:$4 sm:$0xff]   ;;  %v3122_v20 = vld [vmem:[#allocation5 + $0xf8] ss:$36 sps:$4 sm:$0xff]   ;;  %v3130_v24 = vld [vmem:[#allocation5 + $0x68] ss:$36 sps:$4 sm:$0xff]  }
  0xa5   : > { %948 = vmatprep.subr.bf16.mxu0 %v3076_v29  ;;  %1021 = vmatprep.subr.bf16.mxu1 %v3078_v30  ;;  %v3134_v25 = vld [vmem:[#allocation5 + $0x20] ss:$36 sps:$4 sm:$0xff]   ;;  %v3835_v27 = vld [vmem:[#allocation10 + $0x8] sm:$0xff]   ;;  %v3842_v28 = vld [vmem:[#allocation10] sm:$0xff]   ;;  %v521_v29 = vlaneseq }
  0xa6   : > { %v3820_v26 = vld [vmem:[#allocation10 + $0x18] sm:$0xff]  }
  0xa7   : > { %v3855_v30 = vshrl.u32 %v521_v29, 7  ;;  %v3859_v33 = vld [vmem:[#allocation7] sm:$0xff] }
  0xa8   : > { %949 = vmatpush1.bf16.msra.mxu0 %v3080_v31  ;;  %1022 = vmatpush1.bf16.msra.mxu1 %v3081_v32 }
  0xa9   : > { %1080 = vmatprep.subr.bf16.mxu0 %v3084_v35  ;;  %1153 = vmatprep.subr.bf16.mxu1 %v3109_v43  ;;  %v523_v31 = vsub.s32 0, %v3855_v30  ;;  %v531_v32 = vsub.s32 2, %v3855_v30  ;;  %v527_v34 = vsub.s32 1, %v3855_v30 }
  0xab   : > { %967 = vmatmul.mubr.bf16.vlgmr.msra.gmra.mxu0 %v3757_v36  ;;  %1040 = vmatmul.mubr.bf16.vlgmr.msra.gmra.mxu1 %v3757_v36  ;;  %v3863_v35 = vrot.slane %v3859_v33, %v523_v31 }
  0xac   : > { %1081 = vmatpush1.bf16.msra.mxu0 %v3082_v37  ;;  %976 = vmatprep.mubr.bf16.mxu0 %v3506_v0  ;;  %v3866_v37 = vrot.slane %v3859_v33, %v531_v32 }
  0xad   : > { %1082 = vmatprep.subr.bf16.mxu0 %v3087_v38  ;;  %1049 = vmatprep.mubr.bf16.mxu1 %v3506_v0 }
  0xae   : > { %1154 = vmatpush1.bf16.msra.mxu1 %v3107_v42 }
  0xaf   : > { %1155 = vmatprep.subr.bf16.mxu1 %v3113_v46 }
  0xb0   : > { %1083 = vmatpush1.bf16.msra.mxu0 %v3085_v39  ;;  %v3869_v39 = vrot.slane %v3859_v33, %v527_v34 }
  0xb1   : > { %1084 = vmatprep.subr.bf16.mxu0 %v3090_v44 }
  0xb2   : > { %1156 = vmatpush1.bf16.msra.mxu1 %v3111_v50 }
  0xb3   : > { %977 = vmatmul.mubr.bf16.gmra.mxu0 %v3765_v45  ;;  %1050 = vmatmul.mubr.bf16.gmra.mxu1 %v3765_v45 }
  0xb4   : > { %1085 = vmatpush1.bf16.msra.mxu0 %v3088_v47  ;;  %986 = vmatprep.mubr.bf16.mxu0 %v3506_v0 }
  0xb5   : > { %1086 = vmatprep.subr.bf16.mxu0 %v3093_v48  ;;  %1059 = vmatprep.mubr.bf16.mxu1 %v3506_v0 }
  0xb6   : > { %1157 = vmatprep.subr.bf16.mxu1 %v3117_v52 }
  0xb7   : > { %1158 = vmatpush1.bf16.msra.mxu1 %v3115_v55 }
  0xb8   : > { %1087 = vmatpush1.bf16.msra.mxu0 %v3091_v49  ;;  %1159 = vmatprep.subr.bf16.mxu1 %v3121_v62 }
  0xb9   : > { %1088 = vmatprep.subr.bf16.mxu0 %v3096_v54 }
  0xbb   : > { %987 = vmatmul.mubr.bf16.gmra.mxu0 %v3773_v56  ;;  %1060 = vmatmul.mubr.bf16.gmra.mxu1 %v3773_v56 }
  0xbc   : > { %1089 = vmatpush1.bf16.msra.mxu0 %v3094_v57  ;;  %996 = vmatprep.mubr.bf16.mxu0 %v3506_v0 }
  0xbd   : > { %1090 = vmatprep.subr.bf16.mxu0 %v3099_v58  ;;  %1069 = vmatprep.mubr.bf16.mxu1 %v3506_v0 }
  0xbe   : > { %1160 = vmatpush1.bf16.msra.mxu1 %v3119_v63 }
  0xbf   : > { %1161 = vmatprep.subr.bf16.mxu1 %v3125_v1 }
  0xc0   : > { %1091 = vmatpush1.bf16.msra.mxu0 %v3097_v59 }
  0xc1   : > { %1092 = vmatprep.subr.bf16.mxu0 %v3102_v2 }
  0xc2   : > { %1162 = vmatpush1.bf16.msra.mxu1 %v3123_v6 }
  0xc3   : > { %997 = vmatmul.mubr.bf16.gmra.mxu0 %v3781_v3  ;;  %1070 = vmatmul.mubr.bf16.gmra.mxu1 %v3781_v3 }
  0xc4   : > { %1093 = vmatpush1.bf16.msra.mxu0 %v3100_v4  ;;  %1112 = vmatprep.mubr.bf16.mxu0 %v3506_v0 }
  0xc5   : > { %1094 = vmatprep.subr.bf16.mxu0 %v3105_v5  ;;  %1163 = vmatprep.subr.bf16.mxu1 %v3129_v7 }
  0xc6   : > { %1185 = vmatprep.mubr.bf16.mxu1 %v3506_v0  ;;  %1164 = vmatpush1.bf16.msra.mxu1 %v3127_v10 }
  0xc7   : > { %1165 = vmatprep.subr.bf16.mxu1 %v3133_v11 }
  0xc8   : > { %1095 = vmatpush1.bf16.msra.mxu0 %v3103_v8 }
  0xc9   : > { %2696 = vmatprep.subr.bf16.mxu0 %v3106_v9 }
  0xca   : > { %1166 = vmatpush1.bf16.msra.mxu1 %v3131_v13 }
  0xcb   : > { %1113 = vmatmul.mubr.bf16.vlgmr.msra.gmra.mxu0 %v3757_v36  ;;  %1167 = vmatprep.subr.bf16.mxu1 %v3137_v14 }
  0xcc   : > { %1122 = vmatprep.mubr.bf16.mxu0 %v3506_v0  ;;  %2697 = vmatpush3.bf16.msra.mxu0 %v3106_v9 }
  0xcd   : > { %2698 = vmatprep.subr.bf16.mxu0 %v3110_v12 }
  0xce   : > { %1168 = vmatpush1.bf16.msra.mxu1 %v3135_v16 }
  0xcf   : > { %2720 = vmatprep.subr.bf16.mxu1 %v3789_v17 }
  0xd0   : > { %2699 = vmatpush3.bf16.msra.mxu0 %v3110_v12 }
  0xd1   : > { %2700 = vmatprep.subr.bf16.mxu0 %v3114_v15  ;;  %1186 = vmatmul.mubr.bf16.vlgmr.msra.gmra.mxu1 %v3757_v36 }
  0xd2   : > { %2721 = vmatpush3.bf16.msra.mxu1 %v3789_v17  ;;  %1195 = vmatprep.mubr.bf16.mxu1 %v3506_v0 }
  0xd3   : > { %1123 = vmatmul.mubr.bf16.gmra.mxu0 %v3765_v45  ;;  %2722 = vmatprep.subr.bf16.mxu1 %v3793_v19 }
  0xd4   : > { %1132 = vmatprep.mubr.bf16.mxu0 %v3506_v0  ;;  %2701 = vmatpush3.bf16.msra.mxu0 %v3114_v15 }
  0xd5   : > { %2702 = vmatprep.subr.bf16.mxu0 %v3118_v18 }
  0xd6   : > { %2723 = vmatpush3.bf16.msra.mxu1 %v3793_v19 }
  0xd7   : > { %2724 = vmatprep.subr.bf16.mxu1 %v3800_v21 }
  0xd8   : > { %2703 = vmatpush3.bf16.msra.mxu0 %v3118_v18 }
  0xd9   : > { %2704 = vmatprep.subr.bf16.mxu0 %v3122_v20  ;;  %1196 = vmatmul.mubr.bf16.gmra.mxu1 %v3765_v45 }
  0xda   : > { %2725 = vmatpush3.bf16.msra.mxu1 %v3800_v21  ;;  %1205 = vmatprep.mubr.bf16.mxu1 %v3506_v0 }
  0xdb   : > { %1133 = vmatmul.mubr.bf16.gmra.mxu0 %v3773_v56  ;;  %2726 = vmatprep.subr.bf16.mxu1 %v3805_v23 }
  0xdc   : > { %1142 = vmatprep.mubr.bf16.mxu0 %v3506_v0  ;;  %2705 = vmatpush3.bf16.msra.mxu0 %v3122_v20 }
  0xdd   : > { %2706 = vmatprep.subr.bf16.mxu0 %v3126_v22 }
  0xde   : > { %2727 = vmatpush3.bf16.msra.mxu1 %v3805_v23 }
  0xdf   : > { %2728 = vmatprep.subr.bf16.mxu1 %v3820_v26 }
  0xe0   : > { %2707 = vmatpush3.bf16.msra.mxu0 %v3126_v22 }
  0xe1   : > { %2708 = vmatprep.subr.bf16.mxu0 %v3130_v24  ;;  %1206 = vmatmul.mubr.bf16.gmra.mxu1 %v3773_v56 }
  0xe2   : > { %1215 = vmatprep.mubr.bf16.mxu1 %v3506_v0  ;;  %2729 = vmatpush3.bf16.msra.mxu1 %v3820_v26  ;;  %v3828_v0 = vld [vmem:[#allocation10 + $0x10] sm:$0xff]  }
  0xe3   : > { %1143 = vmatmul.mubr.bf16.gmra.mxu0 %v3781_v3  ;;  %2730 = vmatprep.subr.bf16.mxu1 %v3828_v0 }
  0xe4   : > { %2709 = vmatpush3.bf16.msra.mxu0 %v3130_v24  ;;  %2712 = vmatprep.mubr.bf16.mxu0 %v3757_v36 }
  0xe5   : > { %2710 = vmatprep.subr.bf16.mxu0 %v3134_v25 }
  0xe6   : > { %2731 = vmatpush3.bf16.msra.mxu1 %v3828_v0 }
  0xe7   : > { %2732 = vmatprep.subr.bf16.mxu1 %v3835_v27 }
  0xe8   : > { %2711 = vmatpush3.bf16.msra.mxu0 %v3134_v25 }
  0xe9   : > { %2744 = vmatprep.subr.bf16.mxu0 %v3789_v17  ;;  %1216 = vmatmul.mubr.bf16.gmra.mxu1 %v3781_v3 }
  0xea   : > { %2733 = vmatpush3.bf16.msra.mxu1 %v3835_v27 }
  0xeb   : > { %2713 = vmatmul.mubr.bf16.vlgmr.msra.gmra.mxu0 %v3765_v45  ;;  %2734 = vmatprep.subr.bf16.mxu1 %v3842_v28 }
  0xec   : > { %2745 = vmatpush3.bf16.msra.mxu0 %v3789_v17  ;;  %2716 = vmatprep.mubr.bf16.mxu0 %v3773_v56 }
  0xed   : > { %2746 = vmatprep.subr.bf16.mxu0 %v3793_v19 }
  0xee   : > { %2735 = vmatpush3.bf16.msra.mxu1 %v3842_v28 }
  0xef   : > { %2768 = vmatprep.subr.bf16.mxu1 %v3789_v17 }
  0xf0   : > { %2747 = vmatpush3.bf16.msra.mxu0 %v3793_v19 }
  0xf1   : > { %2748 = vmatprep.subr.bf16.mxu0 %v3800_v21 }
  0xf3   : > { %2717 = vmatmul.mubr.bf16.gmra.mxu0 %v3781_v3 }
  0xf4   : > { %2749 = vmatpush3.bf16.msra.mxu0 %v3800_v21 }
  0xf5   : > { %2750 = vmatprep.subr.bf16.mxu0 %v3805_v23 }
  0xf8   : > { %2751 = vmatpush3.bf16.msra.mxu0 %v3805_v23 }
  0xf9   : > { %2752 = vmatprep.subr.bf16.mxu0 %v3820_v26 }
  0xfc   : > { %2753 = vmatpush3.bf16.msra.mxu0 %v3820_v26 }
  0xfd   : > { %2754 = vmatprep.subr.bf16.mxu0 %v3828_v0 }
 0x100   : > { %2755 = vmatpush3.bf16.msra.mxu0 %v3828_v0 }
 0x101   : > { %2756 = vmatprep.subr.bf16.mxu0 %v3835_v27 }
 0x104   : > { %2757 = vmatpush3.bf16.msra.mxu0 %v3835_v27 }
 0x105   : > { %2758 = vmatprep.subr.bf16.mxu0 %v3842_v28 }
 0x108   : > { %2759 = vmatpush3.bf16.msra.mxu0 %v3842_v28 }
 0x109   : > { %2792 = vmatprep.subr.bf16.mxu0 %v3789_v17 }
 0x16b   : > { %v968_v36 = vpop.f32.mrf.mxu0  ;;  %v1041_v38 = vpop.f32.mrf.mxu1 }
 0x16c   : > { %v3874_v42 = vadd.f32 %v968_v36, %v3863_v35  ;;  %v1042_v43 = vadd.f32 %v1041_v38, %v3866_v37  ;;  %v535_v36 = vsub.s32 3, %v3855_v30 }
 0x16d   : > { %v970_v40 = vpop.f32.mrf.mxu0  ;;  %v3871_v41 = vpop.f32.mrf.mxu1 }
 0x16e   : > { %v971_v46 = vadd.f32 %v970_v40, %v3869_v39  ;;  %v1432_v53 = vmul.f32 %v1042_v43, %v3874_v42 }
 0x16f   : > { %v972_v44 = vpop.f32.mrf.mxu0  ;;  %v1045_v45 = vpop.f32.mrf.mxu1 }
 0x170   : > { %v3879_v47 = vadd.f32 %v972_v44, %v3863_v35  ;;  %v1046_v48 = vadd.f32 %v1045_v45, %v3866_v37  ;;  %v1307_v56 = vmul.f32 %v971_v46, %v3874_v42 }
 0x171   : > { %v974_v49 = vpop.f32.mrf.mxu0  ;;  %v3882_v50 = vpop.f32.mrf.mxu1 }
 0x172   : > { %v1433_v51 = vmul.f32 %v1046_v48, %v3879_v47  ;;  %v975_v52 = vadd.f32 %v974_v49, %v3869_v39 }
 0x173   : > { %v978_v54 = vpop.f32.mrf.mxu0  ;;  %v1051_v55 = vpop.f32.mrf.mxu1 }
 0x174   : > { %v1308_v57 = vmul.f32 %v975_v52, %v3879_v47  ;;  %v1440_v60 = vpack.c.bf16 %v1433_v51, %v1432_v53  ;;  %v3892_v61 = vadd.f32 %v978_v54, %v3863_v35  ;;  %v1052_v62 = vadd.f32 %v1051_v55, %v3866_v37 }
 0x175   : > { %v980_v58 = vpop.f32.mrf.mxu0  ;;  %v3889_v59 = vpop.f32.mrf.mxu1  ;;  %v3933_v51 = vrot.slane %v3859_v33, %v535_v36 }
 0x176   : > { %v1315_v63 = vpack.c.bf16 %v1308_v57, %v1307_v56  ;;  %2760 = vmatprep.mubr.bf16.mxu0 %v1440_v60  ;;  %v981_v3 = vadd.f32 %v980_v58, %v3869_v39  ;;  %v1434_v8 = vmul.f32 %v1052_v62, %v3892_v61  ;;  %v539_v58 = vsub.s32 4, %v3855_v30 }
 0x177   : > { %v982_v1 = vpop.f32.mrf.mxu0  ;;  %v1055_v2 = vpop.f32.mrf.mxu1  ;;  %v1048_v60 = vadd.f32 %v3882_v50, %v3933_v51  ;;  %v1054_v36 = vadd.f32 %v3889_v59, %v3933_v51 }
 0x178   : > { %v3897_v4 = vadd.f32 %v982_v1, %v3863_v35  ;;  %v1056_v5 = vadd.f32 %v1055_v2, %v3866_v37  ;;  %2736 = vmatprep.mubr.bf16.mxu1 %v1315_v63  ;;  %v1309_v13 = vmul.f32 %v981_v3, %v3892_v61  ;;  %v1044_v3 = vadd.f32 %v3871_v41, %v3933_v51 }
 0x179   : > { %v984_v6 = vpop.f32.mrf.mxu0  ;;  %v3900_v7 = vpop.f32.mrf.mxu1 }
 0x17a   : > { %v1435_v9 = vmul.f32 %v1056_v5, %v3897_v4  ;;  %v985_v10 = vadd.f32 %v984_v6, %v3869_v39 }
 0x17b   : > { %v988_v11 = vpop.f32.mrf.mxu0  ;;  %v1061_v12 = vpop.f32.mrf.mxu1 }
 0x17c   : > { %v1441_v14 = vpack.c.bf16 %v1435_v9, %v1434_v8  ;;  %v1310_v15 = vmul.f32 %v985_v10, %v3897_v4  ;;  %v3910_v22 = vadd.f32 %v988_v11, %v3863_v35  ;;  %v1062_v24 = vadd.f32 %v1061_v12, %v3866_v37 }
 0x17d   : > { %v990_v16 = vpop.f32.mrf.mxu0  ;;  %v3907_v18 = vpop.f32.mrf.mxu1  ;;  %v1509_v11 = vmul.f32 %v1044_v3, %v3874_v42 }
 0x17e   : > { %v1316_v20 = vpack.c.bf16 %v1310_v15, %v1309_v13  ;;  %2761 = vmatmul.mubr.bf16.vlgmr.msra.gmra.mxu0 %v1441_v14  ;;  %v991_v31 = vadd.f32 %v990_v16, %v3869_v39  ;;  %v1436_v45 = vmul.f32 %v1062_v24, %v3910_v22 }
 0x17f   : > { %v992_v25 = vpop.f32.mrf.mxu0  ;;  %v1065_v29 = vpop.f32.mrf.mxu1  ;;  %2793 = vmatpush3.bf16.msra.mxu0 %v3789_v17 }
 0x180   : > { %v3916_v32 = vadd.f32 %v992_v25, %v3863_v35  ;;  %v1066_v34 = vadd.f32 %v1065_v29, %v3866_v37  ;;  %2737 = vmatmul.mubr.bf16.vlgmr.msra.gmra.mxu1 %v1316_v20  ;;  %2794 = vmatprep.subr.bf16.mxu0 %v3793_v19  ;;  %v1311_v49 = vmul.f32 %v991_v31, %v3910_v22 }
 0x181   : > { %2769 = vmatpush3.bf16.msra.mxu1 %v3789_v17  ;;  %v994_v38 = vpop.f32.mrf.mxu0  ;;  %v3921_v40 = vpop.f32.mrf.mxu1 }
 0x182   : > { %v1437_v43 = vmul.f32 %v1066_v34, %v3916_v32  ;;  %v995_v44 = vadd.f32 %v994_v38, %v3869_v39  ;;  %2770 = vmatprep.subr.bf16.mxu1 %v3793_v19 }
 0x183   : > { %v998_v46 = vpop.f32.mrf.mxu0  ;;  %v1071_v48 = vpop.f32.mrf.mxu1  ;;  %2795 = vmatpush3.bf16.msra.mxu0 %v3793_v19 }
 0x184   : > { %v1312_v17 = vmul.f32 %v995_v44, %v3916_v32  ;;  %2796 = vmatprep.subr.bf16.mxu0 %v3800_v21  ;;  %v1442_v54 = vpack.c.bf16 %v1437_v43, %v1436_v45  ;;  %v3939_v55 = vadd.f32 %v998_v46, %v3863_v35  ;;  %v1072_v56 = vadd.f32 %v1071_v48, %v3866_v37 }
 0x185   : > { %2771 = vmatpush3.bf16.msra.mxu1 %v3793_v19  ;;  %v1000_v52 = vpop.f32.mrf.mxu0  ;;  %v3936_v53 = vpop.f32.mrf.mxu1 }
 0x186   : > { %2772 = vmatprep.subr.bf16.mxu1 %v3800_v21  ;;  %v1317_v57 = vpack.c.bf16 %v1312_v17, %v1311_v49  ;;  %2764 = vmatprep.mubr.bf16.mxu0 %v1442_v54  ;;  %v1001_v63 = vadd.f32 %v1000_v52, %v3869_v39  ;;  %v1438_v50 = vmul.f32 %v1072_v56, %v3939_v55 }
 0x187   : > { %v1002_v62 = vpop.f32.mrf.mxu0  ;;  %v1075_v19 = vpop.f32.mrf.mxu1  ;;  %2797 = vmatpush3.bf16.msra.mxu0 %v3800_v21 }
 0x188   : > { %v3949_v1 = vadd.f32 %v1002_v62, %v3863_v35  ;;  %v1076_v2 = vadd.f32 %v1075_v19, %v3866_v37  ;;  %2740 = vmatprep.mubr.bf16.mxu1 %v1317_v57  ;;  %2798 = vmatprep.subr.bf16.mxu0 %v3805_v23  ;;  %v3960_v35 = vrot.slane %v3859_v33, %v539_v58 }
 0x189   : > { %2773 = vmatpush3.bf16.msra.mxu1 %v3800_v21  ;;  %v1004_v5 = vpop.f32.mrf.mxu0  ;;  %v1510_v37 = vmul.f32 %v1048_v60, %v3879_v47  ;;  %v1313_v21 = vmul.f32 %v1001_v63, %v3939_v55  ;;  %v1077_v45 = vpop.f32.mrf.mxu1  ;;  %v1074_v57 = vadd.f32 %v3936_v53, %v3933_v51 }
 0x18a   : > { %v1439_v6 = vmul.f32 %v1076_v2, %v3949_v1  ;;  %v1005_v8 = vadd.f32 %v1004_v5, %v3869_v39  ;;  %2774 = vmatprep.subr.bf16.mxu1 %v3805_v23 }
 0x18b   : > { %v1114_v9 = vpop.f32.mrf.mxu0  ;;  %2799 = vmatpush3.bf16.msra.mxu0 %v3805_v23  ;;  %v1517_v15 = vpack.c.bf16 %v1510_v37, %v1509_v11  ;;  %v1515_v63 = vmul.f32 %v1074_v57, %v3939_v55  ;;  %v3146_v37 = vld [vmem:[#allocation8 + $0x38] sm:$0xff]  }
 0x18c   : > { %v1314_v41 = vmul.f32 %v1005_v8, %v3949_v1  ;;  %v1443_v10 = vpack.c.bf16 %v1439_v6, %v1438_v50  ;;  %2800 = vmatprep.subr.bf16.mxu0 %v3820_v26  ;;  %v1115_v12 = vadd.f32 %v1114_v9, %v3960_v35  ;;  %v3150_v11 = vld [vmem:[#allocation8 + $0x18] sm:$0xff]  }
 0x18d   : > { %2775 = vmatpush3.bf16.msra.mxu1 %v3805_v23  ;;  %v3970_v39 = vpop.f32.mrf.mxu0  ;;  %v4111_v57 = vld [vmem:[#allocation11 + $0x38] sm:$0xff] }
 0x18e   : > { %2765 = vmatmul.mubr.bf16.gmra.mxu0 %v1443_v10  ;;  %2776 = vmatprep.subr.bf16.mxu1 %v3820_v26  ;;  %v1318_v13 = vpack.c.bf16 %v1314_v41, %v1313_v21  ;;  %v1586_v20 = vmul.f32 %v1115_v12, %v3874_v42  ;;  %v1068_v42 = vadd.f32 %v3921_v40, %v3933_v51  ;;  %v3147_v21 = vld [vmem:[#allocation8 + $0x30] sm:$0xff]  }
 0x18f   : > { %v1118_v14 = vpop.f32.mrf.mxu0  ;;  %2801 = vmatpush3.bf16.msra.mxu0 %v3820_v26  ;;  %4585 = vst [vmem:[#allocation34_spill] sm:$0xff] %v4111_v57 }
 0x190   : > { %v1119_v16 = vadd.f32 %v1118_v14, %v3960_v35  ;;  %2741 = vmatmul.mubr.bf16.gmra.mxu1 %v1318_v13  ;;  %2802 = vmatprep.subr.bf16.mxu0 %v3828_v0  ;;  %v1514_v59 = vmul.f32 %v1068_v42, %v3916_v32  ;;  %v3151_v13 = vld [vmem:[#allocation8 + $0x10] sm:$0xff]  }
 0x191   : > { %2777 = vmatpush3.bf16.msra.mxu1 %v3820_v26  ;;  %v3978_v23 = vpop.f32.mrf.mxu0  ;;  %2784 = vmatprep.mubr.bf16.mxu1 %v1517_v15  ;;  %v1058_v26 = vadd.f32 %v3900_v7, %v3933_v51  ;;  %v1064_v7 = vadd.f32 %v3907_v18, %v3933_v51  ;;  %v1511_v18 = vmul.f32 %v1054_v36, %v3892_v61  ;;  %v3152_v15 = vld [vmem:[#allocation8 + $0x8] sm:$0xff]  }
 0x192   : > { %v1587_v24 = vmul.f32 %v1119_v16, %v3879_v47  ;;  %2778 = vmatprep.subr.bf16.mxu1 %v3828_v0  ;;  %v3153_v16 = vld [vmem:[#allocation8] sm:$0xff]  }
 0x193   : > { %v1124_v25 = vpop.f32.mrf.mxu0  ;;  %2803 = vmatpush3.bf16.msra.mxu0 %v3828_v0  ;;  %v1512_v43 = vmul.f32 %v1058_v26, %v3897_v4 }
 0x194   : > { %2804 = vmatprep.subr.bf16.mxu0 %v3835_v27  ;;  %v1594_v29 = vpack.c.bf16 %v1587_v24, %v1586_v20  ;;  %v1125_v34 = vadd.f32 %v1124_v25, %v3960_v35 }
 0x195   : > { %2779 = vmatpush3.bf16.msra.mxu1 %v3828_v0  ;;  %v3986_v31 = vpop.f32.mrf.mxu0  ;;  %v1518_v17 = vpack.c.bf16 %v1512_v43, %v1511_v18  ;;  %v4068_v43 = vld [vmem:[#allocation11 + $0x70] sm:$0xff]  ;;  %v4087_v18 = vld [vmem:[#allocation11 + $0x58] sm:$0xff] }
 0x196   : > { %2808 = vmatprep.mubr.bf16.mxu0 %v1594_v29  ;;  %2780 = vmatprep.subr.bf16.mxu1 %v3835_v27  ;;  %v1588_v40 = vmul.f32 %v1125_v34, %v3892_v61  ;;  %4574 = vst [vmem:[#allocation23_spill] sm:$0xff] %v4068_v43  ;;  %4578 = vst [vmem:[#allocation27_spill] sm:$0xff] %v4087_v18 }
 0x197   : > { %v1128_v47 = vpop.f32.mrf.mxu0  ;;  %2805 = vmatpush3.bf16.msra.mxu0 %v3835_v27 }
 0x198   : > { %v1129_v0 = vadd.f32 %v1128_v47, %v3960_v35  ;;  %2806 = vmatprep.subr.bf16.mxu0 %v3842_v28 }
 0x199   : > { %2781 = vmatpush3.bf16.msra.mxu1 %v3835_v27  ;;  %v4002_v38 = vpop.f32.mrf.mxu0  ;;  %v1513_v27 = vmul.f32 %v1064_v7, %v3910_v22  ;;  %v4066_v7 = vld [vmem:[#allocation11 + $0x78] sm:$0xff] }
 0x19a   : > { %v1589_v44 = vmul.f32 %v1129_v0, %v3897_v4  ;;  %2782 = vmatprep.subr.bf16.mxu1 %v3842_v28  ;;  %v1078_v4 = vadd.f32 %v1077_v45, %v3933_v51  ;;  %4573 = vst [vmem:[#allocation22_spill] sm:$0xff] %v4066_v7  ;;  %v4081_v45 = vld [vmem:[#allocation11 + $0x60] sm:$0xff] }
 0x19b   : > { %v1134_v46 = vpop.f32.mrf.mxu0  ;;  %2807 = vmatpush3.bf16.msra.mxu0 %v3842_v28  ;;  %v1519_v56 = vpack.c.bf16 %v1514_v59, %v1513_v27  ;;  %4576 = vst [vmem:[#allocation25_spill] sm:$0xff] %v4081_v45  ;;  %v4093_v27 = vld [vmem:[#allocation11 + $0x50] sm:$0xff] }
 0x19c   : > { %v1595_v48 = vpack.c.bf16 %v1589_v44, %v1588_v40  ;;  %v1135_v52 = vadd.f32 %v1134_v46, %v3960_v35  ;;  %2840 = vmatprep.subr.mxu0 %v4066_v7  ;;  %v4075_v44 = vld [vmem:[#allocation11 + $0x68] sm:$0xff]  ;;  %4579 = vst [vmem:[#allocation28_spill] sm:$0xff] %v4093_v27 }
 0x19d   : > { %2783 = vmatpush3.bf16.msra.mxu1 %v3842_v28  ;;  %v4013_v49 = vpop.f32.mrf.mxu0  ;;  %v1516_v28 = vmul.f32 %v1078_v4, %v3949_v1  ;;  %4575 = vst [vmem:[#allocation24_spill] sm:$0xff] %v4075_v44  ;;  %v4099_v4 = vld [vmem:[#allocation11 + $0x48] sm:$0xff] }
 0x19e   : > { %2809 = vmatmul.mubr.bf16.vlgmr.msra.gmra.mxu0 %v1595_v48  ;;  %v1590_v60 = vmul.f32 %v1135_v52, %v3910_v22  ;;  %2816 = vmatprep.subr.bf16.mxu1 %v3146_v37  ;;  %4581 = vst [vmem:[#allocation30_spill] sm:$0xff] %v4099_v4 }
 0x19f   : > { %v1138_v54 = vpop.f32.mrf.mxu0  ;;  %v1520_v53 = vpack.c.bf16 %v1516_v28, %v1515_v63  ;;  %2841 = vmatpush3.msra.mxu0 %v4066_v7  ;;  %v4117_v28 = vld [vmem:[#allocation11 + $0x30] sm:$0xff] }
 0x1a0   : > { %v1139_v61 = vadd.f32 %v1138_v54, %v3960_v35  ;;  %2785 = vmatmul.mubr.bf16.vlgmr.msra.gmra.mxu1 %v1518_v17  ;;  %2842 = vmatprep.subr.mxu0 %v4068_v43  ;;  %v4105_v54 = vld [vmem:[#allocation11 + $0x40] sm:$0xff]  ;;  %4587 = vst [vmem:[#allocation36_spill] sm:$0xff] %v4117_v28 }
 0x1a1   : > { %2788 = vmatprep.mubr.bf16.mxu1 %v1519_v56  ;;  %v4020_v58 = vpop.f32.mrf.mxu0  ;;  %2817 = vmatpush3.bf16.msra.mxu1 %v3146_v37  ;;  %4583 = vst [vmem:[#allocation32_spill] sm:$0xff] %v4105_v54  ;;  %v543_v37 = vsub.s32 5, %v3855_v30 }
 0x1a2   : > { %4570 = vst [vmem:[#allocation19_spill] sm:$0xff] %v4020_v58  ;;  %v1591_v62 = vmul.f32 %v1139_v61, %v3916_v32  ;;  %v4032_v32 = vpop.f32.mrf.mxu1  ;;  %2818 = vmatprep.subr.bf16.mxu1 %v3147_v21  ;;  %2843 = vmatpush3.msra.mxu0 %v4068_v43 }
 0x1a3   : > { %v1144_v19 = vpop.f32.mrf.mxu0  ;;  %2844 = vmatprep.subr.mxu0 %v4075_v44 }
 0x1a4   : > { %v1596_v2 = vpack.c.bf16 %v1591_v62, %v1590_v60  ;;  %v1145_v51 = vadd.f32 %v1144_v19, %v3960_v35  ;;  %v4034_v9 = vpop.f32.mrf.mxu1  ;;  %2845 = vmatpush3.msra.mxu0 %v4075_v44  ;;  %v4123_v62 = vld [vmem:[#allocation11 + $0x28] sm:$0xff] }
 0x1a5   : > { %v4026_v3 = vpop.f32.mrf.mxu0  ;;  %2819 = vmatpush3.bf16.msra.mxu1 %v3147_v21  ;;  %2846 = vmatprep.subr.mxu0 %v4081_v45  ;;  %4588 = vst [vmem:[#allocation37_spill] sm:$0xff] %v4123_v62  ;;  %v547_v21 = vsub.s32 6, %v3855_v30 }
 0x1a6   : > { %2812 = vmatprep.mubr.bf16.mxu0 %v1596_v2  ;;  %v1592_v6 = vmul.f32 %v1145_v51, %v3939_v55  ;;  %v4036_v41 = vpop.f32.mrf.mxu1  ;;  %2847 = vmatpush3.msra.mxu0 %v4081_v45 }
 0x1a7   : > { %v1148_v5 = vpop.f32.mrf.mxu0  ;;  %2848 = vmatprep.subr.mxu0 %v4087_v18 }
 0x1a8   : > { %v1149_v50 = vadd.f32 %v1148_v5, %v3960_v35  ;;  %2789 = vmatmul.mubr.bf16.gmra.mxu1 %v1520_v53  ;;  %v3148_v35 = vld [vmem:[#allocation8 + $0x28] sm:$0xff]   ;;  %v4038_v55 = vpop.f32.mrf.mxu1  ;;  %2849 = vmatpush3.msra.mxu0 %v4087_v18 }
 0x1a9   : > { %2820 = vmatprep.subr.bf16.mxu1 %v3148_v35  ;;  %v4048_v24 = vpop.f32.mrf.mxu0  ;;  %2850 = vmatprep.subr.mxu0 %v4093_v27 }
 0x1aa   : > { %v1593_v22 = vmul.f32 %v1149_v50, %v3949_v1  ;;  %2821 = vmatpush3.bf16.msra.mxu1 %v3148_v35  ;;  %v3149_v1 = vld [vmem:[#allocation8 + $0x20] sm:$0xff]   ;;  %v4040_v10 = vpop.f32.mrf.mxu1  ;;  %2851 = vmatpush3.msra.mxu0 %v4093_v27 }
 0x1ab   : > { %2822 = vmatprep.subr.bf16.mxu1 %v3149_v1  ;;  %v4050_v25 = vpop.f32.mrf.mxu0  ;;  %2852 = vmatprep.subr.mxu0 %v4099_v4 }
 0x1ac   : > { %v1597_v8 = vpack.c.bf16 %v1593_v22, %v1592_v6  ;;  %v4042_v12 = vpop.f32.mrf.mxu1  ;;  %2853 = vmatpush3.msra.mxu0 %v4099_v4  ;;  %v4205_v4 = vld [vmem:[#allocation7 + $0x8] ss:$0 sm:$0xff] }
 0x1ad   : > { %v4054_v26 = vpop.f32.mrf.mxu0  ;;  %2854 = vmatprep.subr.mxu0 %v4105_v54 }
 0x1ae   : > { %2813 = vmatmul.mubr.bf16.gmra.mxu0 %v1597_v8  ;;  %2823 = vmatpush3.bf16.msra.mxu1 %v3149_v1  ;;  %v4044_v14 = vpop.f32.mrf.mxu1  ;;  %v551_v1 = vsub.s32 7, %v3855_v30 }
 0x1af   : > { %2824 = vmatprep.subr.bf16.mxu1 %v3150_v11  ;;  %v4058_v42 = vpop.f32.mrf.mxu0  ;;  %2855 = vmatpush3.msra.mxu0 %v4105_v54 }
 0x1b0   : > { %v4046_v20 = vpop.f32.mrf.mxu1  ;;  %2856 = vmatprep.subr.mxu0 %v4111_v57 }
 0x1b1   : > { %v4062_v36 = vpop.f32.mrf.mxu0  ;;  %2857 = vmatpush3.msra.mxu0 %v4111_v57 }
 0x1b2   : > { %2825 = vmatpush3.bf16.msra.mxu1 %v3150_v11  ;;  %v4052_v29 = vpop.f32.mrf.mxu1  ;;  %2858 = vmatprep.subr.mxu0 %v4117_v28 }
 0x1b3   : > { %2826 = vmatprep.subr.bf16.mxu1 %v3151_v13  ;;  %v4072_v40 = vpop.f32.mrf.mxu0  ;;  %2859 = vmatpush3.msra.mxu0 %v4117_v28 }
 0x1b4   : > { %v4056_v34 = vpop.f32.mrf.mxu1  ;;  %2860 = vmatprep.subr.mxu0 %v4123_v62 }
 0x1b5   : > { %v4084_v46 = vpop.f32.mrf.mxu0  ;;  %2861 = vmatpush3.msra.mxu0 %v4123_v62  ;;  %v4165_v62 = vrot.slane %v3859_v33, %v551_v1 }
 0x1b6   : > { %2827 = vmatpush3.bf16.msra.mxu1 %v3151_v13  ;;  %v4060_v47 = vpop.f32.mrf.mxu1  ;;  %4577 = vst [vmem:[#allocation26_spill] sm:$0xff] %v4084_v46  ;;  %v4157_v13 = vrot.slane %v3859_v33, %v543_v37 }
 0x1b7   : > { %2828 = vmatprep.subr.bf16.mxu1 %v3152_v15  ;;  %4571 = vst [vmem:[#allocation20_spill] sm:$0xff] %v4060_v47  ;;  %v4096_v17 = vpop.f32.mrf.mxu0  ;;  %4591 = vst [vmem:[#allocation40_spill] sm:$0xff] %v4165_v62 }
 0x1b8   : > { %v4064_v0 = vpop.f32.mrf.mxu1  ;;  %4580 = vst [vmem:[#allocation29_spill] sm:$0xff] %v4096_v17  ;;  %4589 = vst [vmem:[#allocation38_spill] sm:$0xff] %v4157_v13  ;;  %v4171_v57 = vadd.f32 %v3970_v39, %v4157_v13  ;;  %v4175_v30 = vadd.f32 %v3978_v23, %v4157_v13  ;;  %v4179_v37 = vadd.f32 %v3986_v31, %v4157_v13 }
 0x1b9   : > { %4572 = vst [vmem:[#allocation21_spill] sm:$0xff] %v4064_v0  ;;  %v4108_v56 = vpop.f32.mrf.mxu0  ;;  %v4189_v54 = vadd.f32 %v4002_v38, %v4157_v13  ;;  %v4193_v39 = vadd.f32 %v4034_v9, %v4165_v62  ;;  %v4209_v38 = vadd.f32 %v4038_v55, %v4165_v62 }
 0x1ba   : > { %2829 = vmatpush3.bf16.msra.mxu1 %v3152_v15  ;;  %v4078_v59 = vpop.f32.mrf.mxu1  ;;  %4584 = vst [vmem:[#allocation33_spill] sm:$0xff] %v4108_v56  ;;  %v4160_v15 = vrot.slane %v3859_v33, %v547_v21  ;;  %v4225_v56 = vadd.f32 %v4046_v20, %v4165_v62  ;;  %v4243_v20 = vadd.f32 %v4056_v34, %v4165_v62 }
 0x1bb   : > { %2830 = vmatprep.subr.bf16.mxu1 %v3153_v16 }
 0x1bc   : > { %v4090_v48 = vpop.f32.mrf.mxu1  ;;  %4590 = vst [vmem:[#allocation39_spill] sm:$0xff] %v4160_v15  ;;  %v4183_v21 = vadd.f32 %v4032_v32, %v4160_v15  ;;  %v4197_v23 = vadd.f32 %v4036_v41, %v4160_v15  ;;  %v4203_v32 = vadd.f32 %v4013_v49, %v4157_v13  ;;  %v4213_v9 = vadd.f32 %v4040_v10, %v4160_v15 }
 0x1bd   : > { %v4217_v41 = vadd.f32 %v4042_v12, %v4165_v62  ;;  %v4221_v49 = vadd.f32 %v4044_v14, %v4160_v15  ;;  %v4231_v10 = vadd.f32 %v4026_v3, %v4157_v13  ;;  %v4235_v12 = vadd.f32 %v4048_v24, %v4157_v13  ;;  %4593 = vst [vmem:[#allocation42_spill] sm:$0xff] %v4243_v20 }
 0x1be   : > { %2831 = vmatpush3.bf16.msra.mxu1 %v3153_v16  ;;  %v4102_v52 = vpop.f32.mrf.mxu1  ;;  %v4239_v14 = vadd.f32 %v4052_v29, %v4160_v15  ;;  %v4251_v3 = vadd.f32 %v4205_v4, %v4054_v26  ;;  %v4259_v29 = vadd.f32 %v4078_v59, %v4160_v15  ;;  %v4273_v59 = vadd.f32 %v4090_v48, %v4165_v62 }
 0x1bf   : > { %2884 = vmatprep.subr.mxu1 %v4066_v7  ;;  %4582 = vst [vmem:[#allocation31_spill] sm:$0xff] %v4102_v52  ;;  %4592 = vst [vmem:[#allocation41_spill] sm:$0xff] %v4235_v12  ;;  %v4255_v7 = vadd.f32 %v4058_v42, %v4205_v4  ;;  %v4269_v42 = vadd.f32 %v4205_v4, %v4062_v36 }
 0x1c0   : > { %v4114_v61 = vpop.f32.mrf.mxu1 }
 0x1c1   : > { %4586 = vst [vmem:[#allocation35_spill] sm:$0xff] %v4114_v61 }
 0x23e   : > { %v4120_v60 = vpop.f32.mrf.mxu0 }
 0x240   : > { %v4126_v19 = vpop.f32.mrf.mxu1  ;;  %v4130_v63 = vpop.f32.mrf.mxu0 }
 0x241   : > { %v1665_v31 = vmax.f32 %v4126_v19, %v4120_v60 }
 0x242   : > { %v4133_v2 = vpop.f32.mrf.mxu1  ;;  %v4135_v51 = vpop.f32.mrf.mxu0 }
 0x243   : > { %v1663_v55 = vmax.f32 %v4133_v2, %v4130_v63 }
 0x244   : > { %v4137_v53 = vpop.f32.mrf.mxu1  ;;  %v4139_v5 = vpop.f32.mrf.mxu0 }
 0x245   : > { %v1666_v34 = vmax.f32 %v4137_v53, %v4135_v51 }
 0x246   : > { %v4141_v50 = vpop.f32.mrf.mxu1 }
 0x24e   : > { %v4143_v6 = vpop.f32.mrf.mxu0 }
 0x250   : > { %v4145_v22 = vpop.f32.mrf.mxu1  ;;  %v4147_v8 = vpop.f32.mrf.mxu0 }
 0x252   : > { %v4151_v35 = vpop.f32.mrf.mxu1  ;;  %v4154_v11 = vpop.f32.mrf.mxu0 }
 0x254   : > { %v4162_v16 = vpop.f32.mrf.mxu1  ;;  %v4167_v28 = vpop.f32.mrf.mxu0 }
 0x256   : > { %v4185_v33 = vpop.f32.mrf.mxu1 }
 0x25e   : > { %v2810_v1 = vpop.f32.mrf.mxu0 }
 0x260   : > { %v2786_v27 = vpop.f32.mrf.mxu1  ;;  %v1632_v18 = vpop.f32.mrf.mxu0 }
 0x261   : > { %v1673_v45 = vmax.f32 %v1665_v31, %v2786_v27  ;;  %v4247_v31 = vadd.f32 %v4050_v25, %v4205_v4  ;;  %v1664_v25 = vmax.f32 %v4141_v50, %v4139_v5 }
 0x262   : > { %v1555_v44 = vpop.f32.mrf.mxu1  ;;  %v2811_v0 = vpop.f32.mrf.mxu0 }
 0x263   : > { %v1681_v43 = vmax.f32 %v1673_v45, %v2810_v1  ;;  %v1671_v24 = vmax.f32 %v1663_v55, %v1555_v44 }
 0x264   : > { %v2787_v47 = vpop.f32.mrf.mxu1 }
 0x265   : > { %v1689_v26 = vsub.f32 %v4126_v19, %v1681_v43  ;;  %v1713_v45 = vsub.f32 %v4120_v60, %v1681_v43  ;;  %v1737_v55 = vsub.f32 %v2786_v27, %v1681_v43  ;;  %v1761_v17 = vsub.f32 %v2810_v1, %v1681_v43  ;;  %v1635_v1 = vpop.f32.mrf.mxu0 }
 0x266   : > { %v1679_v61 = vmax.f32 %v1671_v24, %v1632_v18  ;;  %v1674_v12 = vmax.f32 %v1666_v34, %v2787_v47  ;;  %v1558_v52 = vpop.f32.mrf.mxu1  ;;  %v4281_v24 = vadd.f32 %v4072_v40, %v4205_v4 }
 0x267   : > { %v1699_v15 = vmul.f32 1.442695, %v1689_v26  ;;  %v1723_v58 = vmul.f32 1.442695, %v1713_v45  ;;  %v1747_v13 = vmul.f32 1.442695, %v1737_v55  ;;  %v1672_v20 = vmax.f32 %v1664_v25, %v1558_v52 }
 0x268   : > { %v1771_v19 = vmul.f32 1.442695, %v1761_v17  ;;  %v1687_v60 = vsub.f32 %v4133_v2, %v1679_v61  ;;  %v1711_v43 = vsub.f32 %v4130_v63, %v1679_v61  ;;  %v1735_v27 = vsub.f32 %v1555_v44, %v1679_v61  ;;  %v4277_v36 = vpop.f32.mrf.mxu1 }
 0x269   : > { %3154 = vpow2.f32 %v1699_v15  ;;  %v1759_v46 = vsub.f32 %v1632_v18, %v1679_v61  ;;  %v1682_v48 = vmax.f32 %v1674_v12, %v2811_v0  ;;  %v1680_v62 = vmax.f32 %v1672_v20, %v1635_v1 }
 0x26a   : > { %3156 = vpow2.f32 %v1723_v58  ;;  %v1695_v34 = vmul.f32 1.442695, %v1687_v60  ;;  %v1719_v25 = vmul.f32 1.442695, %v1711_v43  ;;  %v1743_v17 = vmul.f32 1.442695, %v1735_v27  ;;  %v4285_v18 = vpop.f32.mrf.mxu1 }
 0x26b   : > { %3158 = vpow2.f32 %v1747_v13  ;;  %v1690_v2 = vsub.f32 %v4137_v53, %v1682_v48  ;;  %v1714_v44 = vsub.f32 %v4135_v51, %v1682_v48  ;;  %v1767_v63 = vmul.f32 1.442695, %v1759_v46 }
 0x26c   : > { %3160 = vpow2.f32 %v1771_v19  ;;  %v1738_v26 = vsub.f32 %v2787_v47, %v1682_v48  ;;  %v1762_v15 = vsub.f32 %v2811_v0, %v1682_v48  ;;  %v1669_v61 = vmax.f32 %v4145_v22, %v4143_v6  ;;  %v4295_v19 = vpop.f32.mrf.mxu1 }
 0x26d   : > { %3162 = vpow2.f32 %v1695_v34  ;;  %v1701_v40 = vmul.f32 1.442695, %v1690_v2  ;;  %v1688_v58 = vsub.f32 %v4141_v50, %v1680_v62  ;;  %v1667_v13 = vmax.f32 %v4151_v35, %v4147_v8 }
 0x26e   : > { %3164 = vpow2.f32 %v1719_v25  ;;  %v1725_v53 = vmul.f32 1.442695, %v1714_v44  ;;  %v1712_v51 = vsub.f32 %v4139_v5, %v1680_v62  ;;  %v2814_v12 = vpop.f32.mrf.mxu0  ;;  %v1749_v47 = vmul.f32 1.442695, %v1738_v26 }
 0x26f   : > { %3166 = vpow2.f32 %v1743_v17  ;;  %v1736_v0 = vsub.f32 %v1558_v52, %v1680_v62  ;;  %v1760_v46 = vsub.f32 %v1635_v1, %v1680_v62  ;;  %v1773_v20 = vmul.f32 1.442695, %v1762_v15  ;;  %v4304_v17 = vpop.f32.mrf.mxu1 }
 0x270   : > { %3168 = vpow2.f32 %v1767_v63  ;;  %v1677_v45 = vmax.f32 %v1669_v61, %v4277_v36  ;;  %v1675_v55 = vmax.f32 %v1667_v13, %v4285_v18  ;;  %v1648_v50 = vpop.f32.mrf.mxu0  ;;  %v1670_v60 = vmax.f32 %v4162_v16, %v4154_v11 }
 0x271   : > { %v1668_v5 = vmax.f32 %v4185_v33, %v4167_v28  ;;  %3170 = vpow2.f32 %v1701_v40  ;;  %v1697_v43 = vmul.f32 1.442695, %v1688_v58  ;;  %v1721_v52 = vmul.f32 1.442695, %v1712_v51 }
 0x272   : > { %3172 = vpow2.f32 %v1725_v53  ;;  %v1685_v62 = vmax.f32 %v1677_v45, %v2814_v12  ;;  %v1683_v27 = vmax.f32 %v1675_v55, %v1648_v50  ;;  %v4301_v1 = vpop.f32.mrf.mxu0  ;;  %v1745_v48 = vmul.f32 1.442695, %v1736_v0 }
 0x273   : > { %3174 = vpow2.f32 %v1749_v47  ;;  %v1769_v34 = vmul.f32 1.442695, %v1760_v46  ;;  %v1678_v25 = vmax.f32 %v1670_v60, %v4295_v19 }
 0x274   : > { %3176 = vpow2.f32 %v1773_v20  ;;  %v1693_v2 = vsub.f32 %v4145_v22, %v1685_v62  ;;  %v1717_v44 = vsub.f32 %v4143_v6, %v1685_v62  ;;  %v1741_v63 = vsub.f32 %v4277_v36, %v1685_v62 }
 0x275   : > { %3178 = vpow2.f32 %v1697_v43  ;;  %v1765_v26 = vsub.f32 %v2814_v12, %v1685_v62  ;;  %v1691_v15 = vsub.f32 %v4151_v35, %v1683_v27  ;;  %v1686_v61 = vmax.f32 %v1678_v25, %v4301_v1 }
 0x276   : > { %v4311_v40 = vpop.eup %3154  ;;  %3180 = vpow2.f32 %v1721_v52  ;;  %v1707_v58 = vmul.f32 1.442695, %v1693_v2  ;;  %v1731_v13 = vmul.f32 1.442695, %v1717_v44  ;;  %v1715_v53 = vsub.f32 %v4147_v8, %v1683_v27  ;;  %v4327_v52 = vpop.f32.mrf.mxu0 }
 0x277   : > { %v4314_v51 = vpop.eup %3156  ;;  %3182 = vpow2.f32 %v1745_v48  ;;  %v1676_v6 = vmax.f32 %v1668_v5, %v4304_v17  ;;  %v1755_v22 = vmul.f32 1.442695, %v1741_v63  ;;  %v1779_v36 = vmul.f32 1.442695, %v1765_v26 }
 0x278   : > { %v3159_v47 = vpop.eup %3158  ;;  %v1793_v35 = vadd.f32 %v4314_v51, %v4311_v40  ;;  %3184 = vpow2.f32 %v1769_v34  ;;  %v1739_v12 = vsub.f32 %v4285_v18, %v1683_v27  ;;  %v1763_v0 = vsub.f32 %v1648_v50, %v1683_v27 }
 0x279   : > { %v4320_v46 = vpop.eup %3160  ;;  %3186 = vpow2.f32 %v1707_v58  ;;  %v1703_v20 = vmul.f32 1.442695, %v1691_v15  ;;  %v1694_v8 = vsub.f32 %v4162_v16, %v1686_v61  ;;  %v1718_v45 = vsub.f32 %v4154_v11, %v1686_v61 }
 0x27a   : > { %v3163_v55 = vpop.eup %3162  ;;  %v1817_v60 = vadd.f32 %v3159_v47, %v1793_v35  ;;  %v4325_v5 = vmul.f32 %v3159_v47, %v4217_v41  ;;  %3188 = vpow2.f32 %v1731_v13  ;;  %v1727_v43 = vmul.f32 1.442695, %v1715_v53 }
 0x27b   : > { %v3165_v62 = vpop.eup %3164  ;;  %3190 = vpow2.f32 %v1755_v22  ;;  %v1751_v18 = vmul.f32 1.442695, %v1739_v12  ;;  %v1775_v50 = vmul.f32 1.442695, %v1763_v0  ;;  %v1709_v27 = vmul.f32 1.442695, %v1694_v8 }
 0x27c   : > { %v3167_v48 = vpop.eup %3166  ;;  %v1841_v34 = vadd.f32 %v4320_v46, %v1817_v60  ;;  %v1791_v16 = vadd.f32 %v3165_v62, %v3163_v55  ;;  %3192 = vpow2.f32 %v1779_v36  ;;  %v1742_v11 = vsub.f32 %v4295_v19, %v1686_v61 }
 0x27d   : > { %v3169_v25 = vpop.eup %3168  ;;  %3194 = vpow2.f32 %v1703_v20  ;;  %v1733_v41 = vmul.f32 1.442695, %v1718_v45  ;;  %v1766_v2 = vsub.f32 %v4301_v1, %v1686_v61  ;;  %v1684_v44 = vmax.f32 %v1676_v6, %v4327_v52 }
 0x27e   : > { %v3171_v63 = vpop.eup %3170  ;;  %3196 = vrcp.f32 %v1841_v34  ;;  %v1815_v26 = vadd.f32 %v3167_v48, %v1791_v16  ;;  %v1783_v15 = vmul.f32 %v3163_v55, %v4171_v57  ;;  %v1799_v58 = vmul.f32 %v3165_v62, %v4183_v21 }
 0x27f   : > { %v3173_v13 = vpop.eup %3172  ;;  %3198 = vpow2.f32 %v1727_v43  ;;  %v1692_v53 = vsub.f32 %v4185_v33, %v1684_v44  ;;  %v1716_v19 = vsub.f32 %v4167_v28, %v1684_v44  ;;  %v1740_v22 = vsub.f32 %v4304_v17, %v1684_v44 }
 0x280   : > { %v3175_v36 = vpop.eup %3174  ;;  %v1839_v47 = vadd.f32 %v3169_v25, %v1815_v26  ;;  %v1794_v1 = vadd.f32 %v3173_v13, %v3171_v63  ;;  %3200 = vpow2.f32 %v1751_v18  ;;  %v1757_v61 = vmul.f32 1.442695, %v1742_v11 }
 0x281   : > { %v3177_v6 = vpop.eup %3176  ;;  %3202 = vpow2.f32 %v1775_v50  ;;  %v1781_v35 = vmul.f32 1.442695, %v1766_v2  ;;  %v1705_v12 = vmul.f32 1.442695, %v1692_v53  ;;  %v1764_v57 = vsub.f32 %v4327_v52, %v1684_v44 }
 0x282   : > { %v3179_v21 = vpop.eup %3178  ;;  %3204 = vrcp.f32 %v1839_v47  ;;  %v1818_v0 = vadd.f32 %v3175_v36, %v1794_v1  ;;  %v1729_v20 = vmul.f32 1.442695, %v1716_v19  ;;  %v1753_v33 = vmul.f32 1.442695, %v1740_v22 }
 0x283   : > { %v3181_v8 = vpop.eup %3180  ;;  %3206 = vpow2.f32 %v1709_v27  ;;  %v1784_v28 = vmul.f32 %v3179_v21, %v4175_v30  ;;  %v1807_v17 = vadd.f32 %v1799_v58, %v1783_v15  ;;  %v1823_v45 = vmul.f32 %v3167_v48, %v4193_v39 }
 0x284   : > { %v3183_v55 = vpop.eup %3182  ;;  %v1842_v60 = vadd.f32 %v3177_v6, %v1818_v0  ;;  %v1792_v43 = vadd.f32 %v3181_v8, %v3179_v21  ;;  %3208 = vpow2.f32 %v1733_v41  ;;  %v1800_v62 = vmul.f32 %v3181_v8, %v4197_v23 }
 0x285   : > { %v3185_v18 = vpop.eup %3184  ;;  %3210 = vpow2.f32 %v1757_v61  ;;  %v1824_v52 = vmul.f32 %v3183_v55, %v4209_v38  ;;  %v1831_v50 = vadd.f32 %v1823_v45, %v1807_v17  ;;  %v1847_v34 = vmul.f32 %v3169_v25, %v4251_v3  ;;  %v4594_v61 = vld [vmem:[#allocation26_spill] sm:$0xff] }
 0x286   : > { %v3187_v16 = vpop.eup %3186  ;;  %3212 = vrcp.f32 %v1842_v60  ;;  %v1816_v27 = vadd.f32 %v3183_v55, %v1792_v43  ;;  %v1808_v30 = vadd.f32 %v1800_v62, %v1784_v28  ;;  %v1848_v11 = vmul.f32 %v3185_v18, %v4269_v42  ;;  %v4598_v28 = vld [vmem:[#allocation39_spill] sm:$0xff] }
 0x287   : > { %v3189_v39 = vpop.eup %3188  ;;  %3214 = vpow2.f32 %v1781_v35  ;;  %v4345_v48 = vadd.f32 %v1847_v34, %v1831_v50  ;;  %v1785_v23 = vmul.f32 %v4311_v40, %v4179_v37  ;;  %v1786_v41 = vmul.f32 %v3171_v63, %v4189_v54  ;;  %v4601_v34 = vld [vmem:[#allocation40_spill] sm:$0xff] }
 0x288   : > { %v3191_v2 = vpop.eup %3190  ;;  %v1840_v38 = vadd.f32 %v3185_v18, %v1816_v27  ;;  %v1797_v44 = vadd.f32 %v3189_v39, %v3187_v16  ;;  %3216 = vpow2.f32 %v1705_v12  ;;  %v1832_v3 = vadd.f32 %v1824_v52, %v1808_v30  ;;  %v4600_v18 = vld [vmem:[#allocation41_spill] sm:$0xff] }
 0x289   : > { %v3193_v25 = vpop.eup %3192  ;;  %3218 = vpow2.f32 %v1729_v20  ;;  %v1777_v26 = vmul.f32 1.442695, %v1764_v57  ;;  %v1801_v42 = vmul.f32 %v4314_v51, %v4213_v9  ;;  %v1802_v15 = vmul.f32 %v3173_v13, %v4221_v49 }
 0x28a   : > { %v3195_v58 = vpop.eup %3194  ;;  %v1826_v53 = vmul.f32 %v3175_v36, %v4225_v56  ;;  %3220 = vrcp.f32 %v1840_v38  ;;  %v4354_v37 = vadd.f32 %v1848_v11, %v1832_v3  ;;  %v1849_v54 = vmul.f32 %v4320_v46, %v4247_v31 }
 0x28b   : > { %v3197_v40 = vpop.eup %3196  ;;  %3222 = vpow2.f32 %v1753_v33  ;;  %v1809_v63 = vadd.f32 %v1801_v42, %v1785_v23  ;;  %v1810_v19 = vadd.f32 %v1802_v15, %v1786_v41  ;;  %v1787_v22 = vmul.f32 %v3195_v58, %v4203_v32  ;;  %v4596_v33 = vld [vmem:[#allocation38_spill] sm:$0xff]  ;;  %v4603_v41 = vld [vmem:[#allocation29_spill] sm:$0xff] }
 0x28c   : > { %v3199_v47 = vpop.eup %3198  ;;  %v1821_v1 = vadd.f32 %v3191_v2, %v1797_v44  ;;  %v1850_v9 = vmul.f32 %v3177_v6, %v4255_v7  ;;  %v1789_v49 = vmul.f32 %v3187_v16, %v4231_v10  ;;  %v1805_v56 = vmul.f32 %v3189_v39, %v4259_v29  ;;  %v4595_v29 = vld [vmem:[#allocation42_spill] sm:$0xff]  ;;  %v4602_v16 = vld [vmem:[#allocation35_spill] sm:$0xff] }
 0x28d   : > { %v3201_v51 = vpop.eup %3200  ;;  %3224 = vpow2.f32 %v1777_v26  ;;  %v1833_v13 = vadd.f32 %v4325_v5, %v1809_v63  ;;  %v1834_v36 = vadd.f32 %v1826_v53, %v1810_v19  ;;  %v1803_v31 = vmul.f32 %v3199_v47, %v4239_v14  ;;  %v4597_v5 = vld [vmem:[#allocation19_spill] sm:$0xff]  ;;  %v4604_v53 = vld [vmem:[#allocation20_spill] sm:$0xff] }
 0x28e   : > { %v3203_v46 = vpop.eup %3202  ;;  %v1277_v35 = vadd.f32 %v4205_v4, %v4594_v61  ;;  %v1795_v32 = vadd.f32 %v3199_v47, %v3195_v58  ;;  %v1813_v12 = vadd.f32 %v1805_v56, %v1789_v49  ;;  %v1829_v57 = vmul.f32 %v3191_v2, %v4273_v59  ;;  %v4599_v14 = vld [vmem:[#allocation31_spill] sm:$0xff] }
 0x28f   : > { %v3205_v7 = vpop.eup %3204  ;;  %v1857_v6 = vadd.f32 %v1849_v54, %v1833_v13  ;;  %v1858_v10 = vadd.f32 %v1850_v9, %v1834_v36  ;;  %v1811_v21 = vadd.f32 %v1803_v31, %v1787_v22  ;;  %v1827_v0 = vmul.f32 %v3201_v51, %v4595_v29 }
 0x290   : > { %v3207_v20 = vpop.eup %3206  ;;  %v1141_v8 = vadd.f32 %v4597_v5, %v4596_v33  ;;  %v1222_v17 = vadd.f32 %v4599_v14, %v4598_v28  ;;  %v1837_v45 = vadd.f32 %v1829_v57, %v1813_v12  ;;  %v1853_v55 = vmul.f32 %v3193_v25, %v4281_v24  ;;  %v4610_v5 = vld [vmem:[#allocation33_spill] sm:$0xff] }
 0x291   : > { %v3209_v60 = vpop.eup %3208  ;;  %v1845_v43 = vadd.f32 %v3193_v25, %v1821_v1  ;;  %v1835_v62 = vadd.f32 %v1827_v0, %v1811_v21  ;;  %v1851_v59 = vmul.f32 %v3203_v46, %v1277_v35  ;;  %v1790_v52 = vmul.f32 %v3207_v20, %v4600_v18 }
 0x292   : > { %v3211_v50 = vpop.eup %3210  ;;  %v1224_v27 = vadd.f32 %v4602_v16, %v4601_v34  ;;  %v1798_v30 = vadd.f32 %v3209_v60, %v3207_v20  ;;  %v1806_v11 = vmul.f32 %v3209_v60, %v1222_v17  ;;  %v1861_v39 = vadd.f32 %v1853_v55, %v1837_v45  ;;  %v4607_v20 = vld [vmem:[#allocation23_spill] sm:$0xff]  ;;  %v4612_v55 = vld [vmem:[#allocation28_spill] sm:$0xff]  ;;  %v4615_v16 = vld [vmem:[#allocation34_spill] sm:$0xff] }
 0x293   : > { %v3213_v23 = vpop.eup %3212  ;;  %v1288_v2 = vadd.f32 %v4603_v41, %v4205_v4  ;;  %v1819_v38 = vadd.f32 %v3201_v51, %v1795_v32  ;;  %v1873_v44 = vmul.f32 %v3197_v40, %v1857_v6  ;;  %v1859_v24 = vadd.f32 %v1851_v59, %v1835_v62  ;;  %v4605_v40 = vld [vmem:[#allocation21_spill] sm:$0xff]  ;;  %v4613_v59 = vld [vmem:[#allocation30_spill] sm:$0xff]  ;;  %v2028_v41 = vld [vmem:[#allocation11 + $0x8] sm:$0xff] }
 0x294   : > { %v3215_v3 = vpop.eup %3214  ;;  %v1822_v25 = vadd.f32 %v3211_v50, %v1798_v30  ;;  %v1874_v26 = vmul.f32 %v3213_v23, %v1858_v10  ;;  %v1814_v42 = vadd.f32 %v1806_v11, %v1790_v52  ;;  %v1830_v15 = vmul.f32 %v3211_v50, %v1224_v27  ;;  %v4614_v50 = vld [vmem:[#allocation32_spill] sm:$0xff]  ;;  %v4617_v30 = vld [vmem:[#allocation37_spill] sm:$0xff]  ;;  %v2031_v11 = vld [vmem:[#allocation11 + $0x20] sm:$0xff] }
 0x295   : > { %v3217_v58 = vpop.eup %3216  ;;  %v1212_v54 = vadd.f32 %v4604_v53, %v4598_v28  ;;  %3226 = vrcp.f32 %v1845_v43  ;;  %v1854_v63 = vmul.f32 %v3215_v3, %v1288_v2  ;;  %v1214_v56 = vadd.f32 %v4605_v40, %v4601_v34  ;;  %v4611_v28 = vld [vmem:[#allocation27_spill] sm:$0xff]  ;;  %v4616_v27 = vld [vmem:[#allocation36_spill] sm:$0xff]  ;;  %2862 = vmatprep.subr.mxu0 %v2031_v11  ;;  %v2029_v23 = vld [vmem:[#allocation11 + $0x10] sm:$0xff] }
 0x296   : > { %v3219_v19 = vpop.eup %3218  ;;  %v1846_v22 = vadd.f32 %v3215_v3, %v1822_v25  ;;  %v1880_v47 = vpack.c.bf16 %v1874_v26, %v1873_v44  ;;  %v1788_v1 = vmul.f32 %v3217_v58, %v1141_v8  ;;  %v1838_v9 = vadd.f32 %v1830_v15, %v1814_v42  ;;  %2863 = vmatpush3.msra.mxu0 %v2031_v11  ;;  %v2027_v2 = vld [vmem:[#allocation11] sm:$0xff]  ;;  %v2558_v44 = vld [vmem:[%s4509_s4] ss:$0 sm:$0xff] }
 0x297   : > { %v3221_v49 = vpop.eup %3220  ;;  %v1843_v51 = vadd.f32 %v3203_v46, %v1819_v38  ;;  %v1796_v13 = vadd.f32 %v3219_v19, %v3217_v58  ;;  %v1804_v36 = vmul.f32 %v3219_v19, %v1212_v54  ;;  %v1871_v61 = vmul.f32 %v3205_v7, %v4345_v48  ;;  %v4606_v46 = vld [vmem:[#allocation22_spill] sm:$0xff]  ;;  %v4608_v48 = vld [vmem:[#allocation24_spill] sm:$0xff]  ;;  %v4609_v7 = vld [vmem:[#allocation25_spill] sm:$0xff] }
 0x298   : > { %v3223_v31 = vpop.eup %3222  ;;  %3228 = vrcp.f32 %v1846_v22  ;;  %v1872_v35 = vmul.f32 %v3221_v49, %v4354_v37  ;;  %v1862_v32 = vadd.f32 %v1854_v63, %v1838_v9  ;;  %v1280_v8 = vadd.f32 %v4205_v4, %v4610_v5  ;;  %v3250_v26 = vld [vmem:[%s3735_s24] sm:$0xff]  ;;  %v3251_v63 = vld [vmem:[%s3735_s24 + $0x8] sm:$0xff]  ;;  %v3252_v22 = vld [vmem:[%s3735_s24 + $0x10] sm:$0xff] }
 0x299   : > { %v1820_v12 = vadd.f32 %v3223_v31, %v1796_v13  ;;  %v1812_v57 = vadd.f32 %v1804_v36, %v1788_v1  ;;  %v1828_v6 = vmul.f32 %v3223_v31, %v1214_v56  ;;  %3230 = vrcp.f32 %v1843_v51  ;;  %v3253_v1 = vld [vmem:[%s3735_s24 + $0x18] sm:$0xff]  ;;  %v3254_v13 = vld [vmem:[%s3735_s24 + $0x20] sm:$0xff] }
 0x29a   : > { %v3225_v10 = vpop.eup %3224  ;;  %v1879_v21 = vpack.c.bf16 %v1872_v35, %v1871_v61 }
 0x29b   : > { %v1844_v29 = vadd.f32 %v3225_v10, %v1820_v12  ;;  %v1836_v0 = vadd.f32 %v1828_v6, %v1812_v57  ;;  %v1852_v45 = vmul.f32 %v3225_v10, %v1280_v8  ;;  %v3255_v12 = vld [vmem:[%s3735_s24 + $0x28] sm:$0xff]  ;;  %v3256_v6 = vld [vmem:[%s3735_s24 + $0x30] sm:$0xff] }
 0x29c   : > { %2832 = vmatprep.mubr.bf16.mxu1 %v1879_v21  ;;  %v3257_v21 = vld [vmem:[%s3735_s24 + $0x38] sm:$0xff]  ;;  %s3416_s24 = scalar_lea.vmem %s4461_s20, 1024 }
 0x29d   : > { %3232 = vrcp.f32 %v1844_v29  ;;  %2833 = vmatmul.mubr.bf16.vlgmr.msra.gmra.mxu1 %v1880_v47  ;;  %v1860_v62 = vadd.f32 %v1852_v45, %v1836_v0  ;;  %p3417_p2 = scmp.ne.s32.totalorder %s4461_s20, %s3416_s24  ;;  %p3424_p13 = scmp.lt.s32.totalorder %s3422_s23, %s3416_s24 }
 0x29e   : > { %2885 = vmatpush3.msra.mxu1 %v4606_v46 }
 0x29f   : > { %2886 = vmatprep.subr.mxu1 %v4607_v20  ;;  %p3418_p8 = pnand %p3417_p2, %p4618_p4  ;;  %p3425_p1 = por %p3424_p13, %p3423_p6 }
 0x2a0   : > { %2887 = vmatpush3.msra.mxu1 %v4607_v20 }
 0x2a1   : > { %2888 = vmatprep.subr.mxu1 %v4608_v48  ;;  %p3419_p9 = pneg %p3418_p8 }
 0x2a2   : > { %v3227_v37 = vpop.eup %3226  ;;  %2889 = vmatpush3.msra.mxu1 %v4608_v48 }
 0x2a3   : > { %2890 = vmatprep.subr.mxu1 %v4609_v7  ;;  %v1877_v14 = vmul.f32 %v3227_v37, %v1861_v39  ;;  %v2030_v39 = vld [vmem:[#allocation11 + $0x18] sm:$0xff]  ;;  %p3426_p3 = pnand %p3425_p1, %p3419_p9 }
 0x2a4   : > { %2891 = vmatpush3.msra.mxu1 %v4609_v7  ;;  %2864 = vmatprep.subr.mxu0 %v2030_v39 }
 0x2a5   : > { %v3229_v33 = vpop.eup %3228  ;;  %2892 = vmatprep.subr.mxu1 %v4611_v28  ;;  %2865 = vmatpush3.msra.mxu0 %v2030_v39 }
 0x2a6   : > { %v1878_v17 = vmul.f32 %v3229_v33, %v1862_v32  ;;  %2893 = vmatpush3.msra.mxu1 %v4611_v28  ;;  %v3231_v60 = vpop.eup %3230  ;;  %2866 = vmatprep.subr.mxu0 %v2029_v23 }
 0x2a7   : > { %2894 = vmatprep.subr.mxu1 %v4612_v55  ;;  %v1875_v4 = vmul.f32 %v3231_v60, %v1859_v24  ;;  %2867 = vmatpush3.msra.mxu0 %v2029_v23 }
 0x2a8   : > { %v1882_v43 = vpack.c.bf16 %v1878_v17, %v1877_v14  ;;  %2895 = vmatpush3.msra.mxu1 %v4612_v55  ;;  %2868 = vmatprep.subr.mxu0 %v2028_v41 }
 0x2a9   : > { %2896 = vmatprep.subr.mxu1 %v4613_v59  ;;  %2869 = vmatpush3.msra.mxu0 %v2028_v41 }
 0x2aa   : > { %v3233_v18 = vpop.eup %3232  ;;  %2897 = vmatpush3.msra.mxu1 %v4613_v59  ;;  %2870 = vmatprep.subr.mxu0 %v2027_v2 }
 0x2ab   : > { %v1876_v52 = vmul.f32 %v3233_v18, %v1860_v62  ;;  %2898 = vmatprep.subr.mxu1 %v4614_v50  ;;  %2871 = vmatpush3.msra.mxu0 %v2027_v2 }
 0x2ac   : > { %2899 = vmatpush3.msra.mxu1 %v4614_v50 }
 0x2ad   : > { %v1881_v34 = vpack.c.bf16 %v1876_v52, %v1875_v4  ;;  %2900 = vmatprep.subr.mxu1 %v4615_v16 }
 0x2ae   : > { %2901 = vmatpush3.msra.mxu1 %v4615_v16 }
 0x2af   : > { %2836 = vmatprep.mubr.bf16.mxu1 %v1881_v34  ;;  %2902 = vmatprep.subr.mxu1 %v4616_v27 }
 0x2b0   : > { %2837 = vmatmul.mubr.bf16.gmra.mxu1 %v1882_v43 }
 0x2b1   : > { %2903 = vmatpush3.msra.mxu1 %v4616_v27 }
 0x2b2   : > { %2904 = vmatprep.subr.mxu1 %v4617_v30 }
 0x2b3   : > { %2905 = vmatpush3.msra.mxu1 %v4617_v30 }
 0x2b4   : > { %2906 = vmatprep.subr.mxu1 %v2031_v11 }
 0x2b5   : > { %2907 = vmatpush3.msra.mxu1 %v2031_v11 }
 0x2b6   : > { %2908 = vmatprep.subr.mxu1 %v2030_v39 }
 0x2b7   : > { %2909 = vmatpush3.msra.mxu1 %v2030_v39 }
 0x2b8   : > { %2910 = vmatprep.subr.mxu1 %v2029_v23 }
 0x2b9   : > { %2911 = vmatpush3.msra.mxu1 %v2029_v23 }
 0x2ba   : > { %2912 = vmatprep.subr.mxu1 %v2028_v41 }
 0x2bb   : > { %2913 = vmatpush3.msra.mxu1 %v2028_v41 }
 0x2bc   : > { %2914 = vmatprep.subr.mxu1 %v2027_v2 }
 0x2bd   : > { %2915 = vmatpush3.msra.mxu1 %v2027_v2 }
 0x35d   : > { %v2834_v38 = vpop.f32.mrf.mxu1 }
 0x35e   : > { %v1997_v15 = vadd.f32 %v2834_v38, %v2558_v44 }
 0x35f   : > { %v1988_v24 = vpop.f32.mrf.mxu1 }
 0x360   : > { %v1989_v3 = vadd.f32 %v2558_v44, %v1988_v24  ;;  %v2021_v47 = vadd.f32 %v3252_v22, %v1997_v15  ;;  %v2567_v24 = vld [vmem:[%s4512_s7] ss:$0 sm:$0xff] }
 0x361   : > { %v2835_v25 = vpop.f32.mrf.mxu1 }
 0x362   : > { %v2019_v42 = vadd.f32 %v3250_v26, %v1989_v3  ;;  %v2000_v54 = vadd.f32 %v2835_v25, %v2558_v44  ;;  %v2568_v26 = vld [vmem:[%s4513_s8] ss:$0 sm:$0xff] }
 0x363   : > { %v1991_v58 = vpop.f32.mrf.mxu1 }
 0x364   : > { %v1992_v53 = vadd.f32 %v2558_v44, %v1991_v58  ;;  %2872 = vmatprep.mubr.f32.mxu0 %v2019_v42  ;;  %v2022_v9 = vadd.f32 %v3253_v1, %v2000_v54 }
 0x366   : > { %v2020_v19 = vadd.f32 %v3251_v63, %v1992_v53 }
 0x368   : > { %2873 = vmatmul.mubr.f32.vlgmr.msra.gmra.mxu0 %v2020_v19 }
 0x369   : > { %2875 = vmatprep.mubr.f32.mxu0 %v2021_v47 }
 0x36c   : > { %2876 = vmatmul.mubr.f32.gmra.mxu0 %v2022_v9 }
 0x370   : > { %v2838_v49 = vpop.f32.mrf.mxu1 }
 0x371   : > { %v2013_v31 = vadd.f32 %v2838_v49, %v2558_v44 }
 0x372   : > { %v2004_v40 = vpop.f32.mrf.mxu1 }
 0x373   : > { %v2005_v56 = vadd.f32 %v2558_v44, %v2004_v40  ;;  %v2025_v10 = vadd.f32 %v3256_v6, %v2013_v31 }
 0x374   : > { %v2839_v51 = vpop.f32.mrf.mxu1 }
 0x375   : > { %v2023_v36 = vadd.f32 %v3254_v13, %v2005_v56  ;;  %v2016_v32 = vadd.f32 %v2839_v51, %v2558_v44 }
 0x376   : > { %v2007_v61 = vpop.f32.mrf.mxu1 }
 0x377   : > { %v2008_v35 = vadd.f32 %v2558_v44, %v2007_v61  ;;  %2878 = vmatprep.mubr.f32.mxu0 %v2023_v36  ;;  %v2026_v29 = vadd.f32 %v3257_v21, %v2016_v32 }
 0x379   : > { %v2024_v57 = vadd.f32 %v3255_v12, %v2008_v35 }
 0x37b   : > { %2879 = vmatmul.mubr.f32.gmra.mxu0 %v2024_v57 }
 0x37c   : > { %2881 = vmatprep.mubr.f32.mxu0 %v2025_v10 }
 0x37f   : > { %2882 = vmatmul.mubr.f32.gmra.mxu0 %v2026_v29 }
 0x428   : > { %v2874_v0 = vpop.f32.mrf.mxu0 }
 0x429   : > { %v2149_v46 = vsub.f32 %v2020_v19, %v2874_v0 }
 0x42a   : > { %v2109_v20 = vpop.f32.mrf.mxu0 }
 0x42b   : > { %v2148_v48 = vsub.f32 %v2019_v42, %v2109_v20  ;;  %v2157_v33 = vmul.f32 %v2149_v46, %v2149_v46 }
 0x42c   : > { %v2877_v37 = vpop.f32.mrf.mxu0 }
 0x42d   : > { %v2156_v7 = vmul.f32 %v2148_v48, %v2148_v48  ;;  %v2151_v5 = vsub.f32 %v2022_v9, %v2877_v37 }
 0x42e   : > { %v2119_v8 = vpop.f32.mrf.mxu0 }
 0x42f   : > { %v2150_v28 = vsub.f32 %v2021_v47, %v2119_v8  ;;  %2916 = vmatprep.mubr.f32.mxu1 %v2156_v7  ;;  %v2159_v17 = vmul.f32 %v2151_v5, %v2151_v5 }
 0x430   : > { %2917 = vmatmul.mubr.f32.vlgmr.msra.gmra.mxu1 %v2157_v33 }
 0x431   : > { %v2158_v14 = vmul.f32 %v2150_v28, %v2150_v28 }
 0x433   : > { %2919 = vmatprep.mubr.f32.mxu1 %v2158_v14 }
 0x434   : > { %2920 = vmatmul.mubr.f32.gmra.mxu1 %v2159_v17 }
 0x43b   : > { %v2880_v45 = vpop.f32.mrf.mxu0 }
 0x43c   : > { %v4418_v55 = vsub.f32 %v2024_v57, %v2880_v45 }
 0x43d   : > { %v2129_v60 = vpop.f32.mrf.mxu0 }
 0x43e   : > { %v4420_v43 = vsub.f32 %v2023_v36, %v2129_v60  ;;  %v2161_v18 = vmul.f32 %v4418_v55, %v4418_v55 }
 0x43f   : > { %v2883_v62 = vpop.f32.mrf.mxu0 }
 0x440   : > { %v2160_v59 = vmul.f32 %v4420_v43, %v4420_v43  ;;  %v4426_v4 = vsub.f32 %v2026_v29, %v2883_v62 }
 0x441   : > { %v2139_v52 = vpop.f32.mrf.mxu0 }
 0x442   : > { %v4428_v50 = vsub.f32 %v2025_v10, %v2139_v52  ;;  %2922 = vmatprep.mubr.f32.mxu1 %v2160_v59  ;;  %v2163_v16 = vmul.f32 %v4426_v4, %v4426_v4 }
 0x443   : > { %2923 = vmatmul.mubr.f32.gmra.mxu1 %v2161_v18 }
 0x444   : > { %v2162_v34 = vmul.f32 %v4428_v50, %v4428_v50 }
 0x446   : > { %2925 = vmatprep.mubr.f32.mxu1 %v2162_v34 }
 0x447   : > { %2926 = vmatmul.mubr.f32.gmra.mxu1 %v2163_v16 }
 0x4f0   : > { %v2918_v27 = vpop.f32.mrf.mxu1 }
 0x4f1   : > { %v2236_v30 = vadd.f32 1e-12, %v2918_v27 }
 0x4f2   : > { %v2230_v11 = vpop.f32.mrf.mxu1 }
 0x4f3   : > { %3234 = vrsqrt.f32 %v2236_v30  ;;  %v2231_v39 = vadd.f32 1e-12, %v2230_v11 }
 0x4f4   : > { %v2921_v23 = vpop.f32.mrf.mxu1 }
 0x4f5   : > { %3236 = vrsqrt.f32 %v2231_v39  ;;  %v2246_v41 = vadd.f32 1e-12, %v2921_v23 }
 0x4f6   : > { %v2240_v2 = vpop.f32.mrf.mxu1 }
 0x4f7   : > { %3238 = vrsqrt.f32 %v2246_v41  ;;  %v2241_v38 = vadd.f32 1e-12, %v2240_v2 }
 0x4f9   : > { %3240 = vrsqrt.f32 %v2241_v38 }
 0x500   : > { %v3235_v44 = vpop.eup %3234 }
 0x501   : > { %v2278_v3 = vmul.f32 %v3235_v44, %v2149_v46 }
 0x502   : > { %v3237_v25 = vpop.eup %3236 }
 0x503   : > { %v2293_v42 = vmul.f32 %v2567_v24, %v2278_v3  ;;  %v2277_v15 = vmul.f32 %v3237_v25, %v2148_v48  ;;  %v2924_v58 = vpop.f32.mrf.mxu1 }
 0x504   : > { %v3239_v53 = vpop.eup %3238  ;;  %v2256_v54 = vadd.f32 1e-12, %v2924_v58 }
 0x505   : > { %v2308_v63 = vadd.f32 %v2568_v26, %v2293_v42  ;;  %v2292_v19 = vmul.f32 %v2567_v24, %v2277_v15  ;;  %v2280_v22 = vmul.f32 %v3239_v53, %v2151_v5  ;;  %v2250_v47 = vpop.f32.mrf.mxu1 }
 0x506   : > { %v3241_v1 = vpop.eup %3240  ;;  %3242 = vrsqrt.f32 %v2256_v54  ;;  %v2251_v9 = vadd.f32 1e-12, %v2250_v47 }
 0x507   : > { %2316 = vst [vmem:[%s4442_s26 + $0x8] sm:$0xff] %v2308_v63  ;;  %v2307_v49 = vadd.f32 %v2568_v26, %v2292_v19  ;;  %v2295_v40 = vmul.f32 %v2567_v24, %v2280_v22  ;;  %v2279_v56 = vmul.f32 %v3241_v1, %v2150_v28  ;;  %v2927_v51 = vpop.f32.mrf.mxu1 }
 0x508   : > { %3244 = vrsqrt.f32 %v2251_v9  ;;  %v2266_v13 = vadd.f32 1e-12, %v2927_v51 }
 0x509   : > { %2315 = vst [vmem:[%s4442_s26] sm:$0xff] %v2307_v49  ;;  %v2310_v36 = vadd.f32 %v2568_v26, %v2295_v40  ;;  %v2294_v31 = vmul.f32 %v2567_v24, %v2279_v56  ;;  %v2260_v61 = vpop.f32.mrf.mxu1 }
 0x50a   : > { %3246 = vrsqrt.f32 %v2266_v13  ;;  %v2261_v35 = vadd.f32 1e-12, %v2260_v61 }
 0x50b   : > { %2318 = vst [vmem:[%s4442_s26 + $0x18] sm:$0xff] %v2310_v36  ;;  %v2309_v32 = vadd.f32 %v2568_v26, %v2294_v31 }
 0x50c   : > { %3248 = vrsqrt.f32 %v2261_v35 }
 0x50d   : > { %2317 = vst [vmem:[%s4442_s26 + $0x10] sm:$0xff] %v2309_v32 }
 0x513   : > { %v3243_v12 = vpop.eup %3242 }
 0x514   : > { %v2282_v57 = vmul.f32 %v3243_v12, %v4418_v55 }
 0x515   : > { %v3245_v6 = vpop.eup %3244 }
 0x516   : > { %v2297_v10 = vmul.f32 %v2567_v24, %v2282_v57  ;;  %v2281_v21 = vmul.f32 %v3245_v6, %v4420_v43 }
 0x517   : > { %v3247_v29 = vpop.eup %3246 }
 0x518   : > { %v2312_v0 = vadd.f32 %v2568_v26, %v2297_v10  ;;  %v2296_v46 = vmul.f32 %v2567_v24, %v2281_v21  ;;  %v2284_v20 = vmul.f32 %v3247_v29, %v4426_v4 }
 0x519   : > { %v3249_v48 = vpop.eup %3248 }
 0x51a   : > { %2320 = vst [vmem:[%s4442_s26 + $0x28] sm:$0xff] %v2312_v0  ;;  %v2311_v37 = vadd.f32 %v2568_v26, %v2296_v46  ;;  %v2299_v7 = vmul.f32 %v2567_v24, %v2284_v20  ;;  %v2283_v33 = vmul.f32 %v3249_v48, %v4428_v50 }
 0x51c   : > { %2319 = vst [vmem:[%s4442_s26 + $0x20] sm:$0xff] %v2311_v37  ;;  %v2314_v5 = vadd.f32 %v2568_v26, %v2299_v7  ;;  %v2298_v8 = vmul.f32 %v2567_v24, %v2283_v33 }
 0x51e   : > { %2322 = vst [vmem:[%s4442_s26 + $0x38] sm:$0xff] %v2314_v5  ;;  %v2313_v28 = vadd.f32 %v2568_v26, %v2298_v8 }
 0x520   : > { %2321 = vst [vmem:[%s4442_s26 + $0x30] sm:$0xff] %v2313_v28 }
 0x521   : > { %3429 = shalt.err (!%p3426_p3)
}
 0x522   : > { %s3430_s22 = scalar_lea.hbm %s4459_s3, 1024  ;;  %s3434_s13 = scalar_lea.hbm %s4514_s9, 4096 }
 0x523   : > { %p3431_p7 = scmp.ne.s32.totalorder %s4459_s3, %s3430_s22  ;;  %p3435_p11 = scmp.lt.s32.totalorder %s4459_s3, %s4514_s9 }
 0x524   : > { %p3436_p12 = scmp.lt.s32.totalorder %s3434_s13, %s3430_s22 }
 0x525   : > { %p3432_p5 = pnand %p3431_p7, %p4618_p4 }
 0x526   : > { %p3437_p0 = por %p3436_p12, %p3435_p11 }
 0x527   : > { %p3433_p10 = pneg %p3432_p5 }
 0x529   : > { %p3438_p2 = pnand %p3437_p0, %p3433_p10 }
 0x52b   : > { %3441 = shalt.err (!%p3438_p2)
}
 0x52c   : > { %s3508_s1 = smov 128   ;;  %s3509_s29 = smov 8  }
 0x52d   : > { %2950 = dma.vmem_to_hbm [thread:$0]  (%p4618_p4), %s4461_s20, 1024, %s4459_s3, %s2324_s17, %s3508_s1, %s3508_s1, %s3509_s29  }
 0x52e PF: > { %p2987_p8 = scmp.ge.s32.totalorder %s3492_s12, 2  ;;  %s2352_s24 = sand.u32 1, %s3480_s30  }
 0x52f   : > { %p4619_p9 = scmp.ne.s32.totalorder %s4558_s21, 0  ;;  %s2353_s15 = scalar_lea.sflag [#allocation4], %s2352_s24 }
 0x531   : > { %p2973_p6 = pnand %p2987_p8, %p4619_p9 }
 0x533   : > { %p2974_p13 = pneg %p2973_p6 }
 0x535   : > { %3475 = dma.done.wait (%p2974_p13), %s2353_s15, 1024  }
 0x536   : > { %3477 = vsyncadd (%p2974_p13), %s2353_s15, 4294966272  ;;  %p25_p1 = scmp.ge.s32.totalorder %s3660_s25, 6   ;;  %s4620_s30 = smov %s3484_s10 }
 0x537   : > { %s4621_s10 = smov %s3488_s11  ;;  %s4622_s11 = smov %s3672_s19 }
 0x538   : > { %s4623_s12 = smov %s3660_s25  ;;  %27 = sbr.rel (!%p25_p1) target bundleno = 12 (0xc), region = 121 }
 0x53d   :  { %2358 = vsyncpa [#allocation3], 1 }
 0x53e   :  { %2360 = vsyncpa [#allocation3 + $0x1], 1 }
 0x53f   :  { %2361 = vsyncpa [#allocation6], 1 }
 0x540   :  { %2362 = vsyncpa [#allocation9], 1 }
 0x541   :  { %2363 = vsyncpa [#allocation12], 1 }
 0x542   :  { %2364 = vsyncpa [#allocation4], 1 }
 0x543   :  { %2366 = vsyncpa [#allocation4 + $0x1], 1 }

</bundles_post_ra>
